<compile_context>
chip_gen: v7x
topology: tpu7x:2x2x1
jax: 0.10.0
libtpu: 0.0.40
codegen_flags: <defaults>
</compile_context>

<pallas_src>
import functools

import jax
import jax.numpy as jnp
from jax.experimental import pallas as pl
from jax.experimental.pallas import tpu as pltpu


# ----------------------------- Fused recurrent kernel --------------------------

def _fused_lstmnet_kernel(pre1_ref, whh1_ref, w2_ref, b2_ref, wfc_ref, bfc_ref,
                          out_ref, h1_scr, c1_scr, h2_scr, c2_scr):
    """One grid step == one block of timesteps. h/c carried in VMEM scratch."""
    tb = pl.program_id(0)

    @pl.when(tb == 0)
    def _():
        h1_scr[...] = jnp.zeros_like(h1_scr)
        c1_scr[...] = jnp.zeros_like(c1_scr)
        h2_scr[...] = jnp.zeros_like(h2_scr)
        c2_scr[...] = jnp.zeros_like(c2_scr)

    Tt = pre1_ref.shape[0]
    H1 = h1_scr.shape[-1]
    H2 = h2_scr.shape[-1]

    # Resident weights: load once per grid step, reused by every unrolled timestep.
    whh1 = whh1_ref[...]        # (H1, 4*H1)
    w2 = w2_ref[...]            # (H1 + H2, 4*H2)  == [W_ih2; W_hh2]
    b2 = b2_ref[...]            # (1, 4*H2)

    def step(tt, carry):
        h1, c1, h2, c2 = carry

        # ---- layer 1: input projection precomputed outside the recurrence ----
        g1 = pre1_ref[tt] + jnp.dot(h1, whh1, preferred_element_type=jnp.float32)
        i1 = jax.nn.sigmoid(g1[:, 0 * H1:1 * H1])
        f1 = jax.nn.sigmoid(g1[:, 1 * H1:2 * H1])
        n1 = jnp.tanh(g1[:, 2 * H1:3 * H1])
        o1 = jax.nn.sigmoid(g1[:, 3 * H1:4 * H1])
        c1 = f1 * c1 + i1 * n1
        h1 = o1 * jnp.tanh(c1)

        # ---- layer 2: single stacked MXU matmul  [h1, h2] @ [W_ih2; W_hh2] ----
        g2 = jnp.dot(jnp.concatenate([h1, h2], axis=1), w2,
                     preferred_element_type=jnp.float32) + b2
        i2 = jax.nn.sigmoid(g2[:, 0 * H2:1 * H2])
        f2 = jax.nn.sigmoid(g2[:, 1 * H2:2 * H2])
        n2 = jnp.tanh(g2[:, 2 * H2:3 * H2])
        o2 = jax.nn.sigmoid(g2[:, 3 * H2:4 * H2])
        c2 = f2 * c2 + i2 * n2
        h2 = o2 * jnp.tanh(c2)

        return (h1, c1, h2, c2)

    carry0 = (h1_scr[...], c1_scr[...], h2_scr[...], c2_scr[...])
    h1, c1, h2, c2 = jax.lax.fori_loop(0, Tt, step, carry0, unroll=True)
    h1_scr[...] = h1
    c1_scr[...] = c1
    h2_scr[...] = h2
    c2_scr[...] = c2

    # Fused fc on the last hidden state of layer 2 (written back to HBM exactly once).
    @pl.when(tb == pl.num_programs(0) - 1)
    def _():
        out_ref[...] = (jnp.dot(h2, wfc_ref[...], preferred_element_type=jnp.float32)
                        + bfc_ref[...])


def _pick_t_block(T, cap=32):
    """Largest divisor of T that is <= cap (timesteps processed per grid step)."""
    tt = min(T, cap)
    while T % tt:
        tt -= 1
    return tt


@functools.partial(jax.jit, static_argnames=("t_block",))
def lstmnet_forward(x_btf, params, t_block=None):
    """x_btf: (B, T, F) batch-first, like the PyTorch module. Returns (B, C) logits."""
    x = x_btf.astype(jnp.float32)
    B, T, F = x.shape
    H1 = params["whh1"].shape[0]
    H2, C = params["wfc"].shape

    # Hoisted input projection for layer 1: one big matmul over all timesteps,
    # produced directly in time-major layout (transpose folded into the einsum).
    pre1 = jnp.einsum("btf,fg->tbg", x, params["wih1"],
                      preferred_element_type=jnp.float32) + params["b1"][None]

    Tt = t_block if t_block is not None else _pick_t_block(T)
    assert T % Tt == 0, (T, Tt)

    return pl.pallas_call(
        _fused_lstmnet_kernel,
        out_shape=jax.ShapeDtypeStruct((B, C), jnp.float32),
        grid_spec=pltpu.PrefetchScalarGridSpec(
            num_scalar_prefetch=0,
            grid=(T // Tt,),
            in_specs=[
                pl.BlockSpec((Tt, B, 4 * H1), lambda tb: (tb, 0, 0)),   # pre1 (time-major)
                pl.BlockSpec((H1, 4 * H1), lambda tb: (0, 0)),          # W_hh1
                pl.BlockSpec((H1 + H2, 4 * H2), lambda tb: (0, 0)),     # [W_ih2; W_hh2]
                pl.BlockSpec((1, 4 * H2), lambda tb: (0, 0)),           # b2
                pl.BlockSpec((H2, C), lambda tb: (0, 0)),               # W_fc
                pl.BlockSpec((1, C), lambda tb: (0, 0)),                # b_fc
            ],
            out_specs=pl.BlockSpec((B, C), lambda tb: (0, 0)),
            scratch_shapes=[
                pltpu.VMEM((B, H1), jnp.float32),   # h1
                pltpu.VMEM((B, H1), jnp.float32),   # c1
                pltpu.VMEM((B, H2), jnp.float32),   # h2
                pltpu.VMEM((B, H2), jnp.float32),   # c2
            ],
        ),
        compiler_params=pltpu.CompilerParams(
            # Recurrence: the time axis must stay sequential ("arbitrary"), since
            # h/c are carried across grid steps in scratch.
            dimension_semantics=("arbitrary",),
        ),
    )(pre1, params["whh1"], params["w2"], params["b2"], params["wfc"], params["bfc"])


# ----------------------------- Parameter init ---------------------------------

def init_params(key, num_features, num_hidden1, num_hidden2, num_classes):
    """PyTorch-style uniform(-1/sqrt(H), 1/sqrt(H)) init, stored transposed so
    kernels do x @ W directly. b_ih and b_hh are pre-summed; layer-2's W_ih/W_hh
    are stacked into one (H1+H2, 4*H2) matrix for the single per-step matmul."""
    def uni(k, shape, bound):
        return jax.random.uniform(k, shape, jnp.float32, -bound, bound)

    ks = jax.random.split(key, 9)
    b1 = 1.0 / jnp.sqrt(jnp.float32(num_hidden1))
    b2 = 1.0 / jnp.sqrt(jnp.float32(num_hidden2))
    wih2 = uni(ks[4], (num_hidden1, 4 * num_hidden2), b2)
    whh2 = uni(ks[5], (num_hidden2, 4 * num_hidden2), b2)
    return {
        # lstm1
        "wih1": uni(ks[0], (num_features, 4 * num_hidden1), b1),
        "whh1": uni(ks[1], (num_hidden1, 4 * num_hidden1), b1),
        "b1": uni(ks[2], (1, 4 * num_hidden1), b1) + uni(ks[3], (1, 4 * num_hidden1), b1),
        # lstm2 (stacked [W_ih2; W_hh2])
        "w2": jnp.concatenate([wih2, whh2], axis=0),
        "b2": uni(ks[6], (1, 4 * num_hidden2), b2) + uni(ks[7], (1, 4 * num_hidden2), b2),
        # fc
        "wfc": uni(ks[8], (num_hidden2, num_classes), b2),
        "bfc": jnp.zeros((1, num_classes), jnp.float32),
    }


# ----------------------------- Pure-JAX reference ------------------------------

def _lstm_ref(x_tbf, wih, whh, bias):
    H = whh.shape[0]
    B = x_tbf.shape[1]

    def step(carry, x_t):
        h, c = carry
        g = x_t @ wih + h @ whh + bias
        i = jax.nn.sigmoid(g[:, 0 * H:1 * H])
        f = jax.nn.sigmoid(g[:, 1 * H:2 * H])
        n = jnp.tanh(g[:, 2 * H:3 * H])
        o = jax.nn.sigmoid(g[:, 3 * H:4 * H])
        c = f * c + i * n
        h = o * jnp.tanh(c)
        return (h, c), h

    h0 = jnp.zeros((B, H), jnp.float32)
    (_, _), hs = jax.lax.scan(step, (h0, h0), x_tbf)
    return hs


def lstmnet_ref(x_btf, params):
    x_tbf = jnp.transpose(x_btf, (1, 0, 2)).astype(jnp.float32)
    H1 = params["whh1"].shape[0]
    o1 = _lstm_ref(x_tbf, params["wih1"], params["whh1"], params["b1"])
    o2 = _lstm_ref(o1, params["w2"][:H1], params["w2"][H1:], params["b2"])
    return o2[-1] @ params["wfc"] + params["bfc"]


# ----------------------------- Main --------------------------------------------

if __name__ == "__main__":
    B, T, F = 2, 8, 4          # batch, seq, num_features
    H1, H2, C = 32, 32, 6      # num_hidden1, num_hidden2, num_classes

    key = jax.random.PRNGKey(0)
    k_x, k_p = jax.random.split(key)
    x = jax.random.normal(k_x, (B, T, F), jnp.float32)
    params = init_params(k_p, F, H1, H2, C)

    out = jax.block_until_ready(lstmnet_forward(x, params))
    ref = lstmnet_ref(x, params)

    assert out.shape == (B, C), out.shape
    assert jnp.allclose(out, ref, atol=1e-4, rtol=1e-4), (out, ref)

    print("KERNEL_OK")
</pallas_src>

<mosaic_0001>
module attributes {stable_mosaic.version = 11 : i64} {
  func.func @_fused_lstmnet_kernel(%arg0: i32, %arg1: memref<8x2x128xf32, #tpu.memory_space<vmem>>, %arg2: memref<32x128xf32, #tpu.memory_space<vmem>>, %arg3: memref<64x128xf32, #tpu.memory_space<vmem>>, %arg4: memref<1x128xf32, #tpu.memory_space<vmem>>, %arg5: memref<32x6xf32, #tpu.memory_space<vmem>>, %arg6: memref<1x6xf32, #tpu.memory_space<vmem>>, %arg7: memref<2x6xf32, #tpu.memory_space<vmem>>, %arg8: memref<2x32xf32, #tpu.memory_space<vmem>>, %arg9: memref<2x32xf32, #tpu.memory_space<vmem>>, %arg10: memref<2x32xf32, #tpu.memory_space<vmem>>, %arg11: memref<2x32xf32, #tpu.memory_space<vmem>>) attributes {dimension_semantics = [#tpu.dimension_semantics<arbitrary>], iteration_bounds = array<i64: 1>, scalar_prefetch = 0 : i64, scratch_operands = 4 : i64, tpu.core_type = #tpu.core_type<tc>, window_params = [{transform_indices = @transform_0, window_bounds = array<i64: 8, 2, 128>}, {pipeline_mode = #tpu.pipeline_mode<synchronous>, transform_indices = @transform_1, window_bounds = array<i64: 32, 128>}, {pipeline_mode = #tpu.pipeline_mode<synchronous>, transform_indices = @transform_2, window_bounds = array<i64: 64, 128>}, {pipeline_mode = #tpu.pipeline_mode<synchronous>, transform_indices = @transform_3, window_bounds = array<i64: 1, 128>}, {pipeline_mode = #tpu.pipeline_mode<synchronous>, transform_indices = @transform_4, window_bounds = array<i64: 32, 6>}, {pipeline_mode = #tpu.pipeline_mode<synchronous>, transform_indices = @transform_5, window_bounds = array<i64: 1, 6>}, {pipeline_mode = #tpu.pipeline_mode<synchronous>, transform_indices = @transform_6, window_bounds = array<i64: 2, 6>}]} {
    %c0_i32 = arith.constant 0 : i32
    %0 = arith.cmpi eq, %arg0, %c0_i32 : i32
    %1 = arith.extui %0 : i1 to i32
    %c0_i32_0 = arith.constant 0 : i32
    %2 = arith.cmpi ne, %1, %c0_i32_0 : i32
    scf.if %2 {
      %cst_104 = arith.constant 0.000000e+00 : f32
      %489 = vector.broadcast %cst_104 : f32 to vector<2x32xf32>
      %c0_105 = arith.constant 0 : index
      %c0_106 = arith.constant 0 : index
      %490 = vector.load %arg8[%c0_105, %c0_106] : memref<2x32xf32, #tpu.memory_space<vmem>>, vector<2x32xf32>
      tpu.vector_store %arg8[%c0_105, %c0_106], %489 {strides = array<i32>} : memref<2x32xf32, #tpu.memory_space<vmem>>, vector<2x32xf32>,
      %cst_107 = arith.constant 0.000000e+00 : f32
      %491 = vector.broadcast %cst_107 : f32 to vector<2x32xf32>
      %c0_108 = arith.constant 0 : index
      %c0_109 = arith.constant 0 : index
      %492 = vector.load %arg9[%c0_108, %c0_109] : memref<2x32xf32, #tpu.memory_space<vmem>>, vector<2x32xf32>
      tpu.vector_store %arg9[%c0_108, %c0_109], %491 {strides = array<i32>} : memref<2x32xf32, #tpu.memory_space<vmem>>, vector<2x32xf32>,
      %cst_110 = arith.constant 0.000000e+00 : f32
      %493 = vector.broadcast %cst_110 : f32 to vector<2x32xf32>
      %c0_111 = arith.constant 0 : index
      %c0_112 = arith.constant 0 : index
      %494 = vector.load %arg10[%c0_111, %c0_112] : memref<2x32xf32, #tpu.memory_space<vmem>>, vector<2x32xf32>
      tpu.vector_store %arg10[%c0_111, %c0_112], %493 {strides = array<i32>} : memref<2x32xf32, #tpu.memory_space<vmem>>, vector<2x32xf32>,
      %cst_113 = arith.constant 0.000000e+00 : f32
      %495 = vector.broadcast %cst_113 : f32 to vector<2x32xf32>
      %c0_114 = arith.constant 0 : index
      %c0_115 = arith.constant 0 : index
      %496 = vector.load %arg11[%c0_114, %c0_115] : memref<2x32xf32, #tpu.memory_space<vmem>>, vector<2x32xf32>
      tpu.vector_store %arg11[%c0_114, %c0_115], %495 {strides = array<i32>} : memref<2x32xf32, #tpu.memory_space<vmem>>, vector<2x32xf32>,
    } else {
    }
    %c0 = arith.constant 0 : index
    %c0_1 = arith.constant 0 : index
    %3 = vector.load %arg2[%c0, %c0_1] : memref<32x128xf32, #tpu.memory_space<vmem>>, vector<32x128xf32>
    %c0_2 = arith.constant 0 : index
    %c0_3 = arith.constant 0 : index
    %4 = vector.load %arg3[%c0_2, %c0_3] : memref<64x128xf32, #tpu.memory_space<vmem>>, vector<64x128xf32>
    %c0_4 = arith.constant 0 : index
    %c0_5 = arith.constant 0 : index
    %5 = vector.load %arg4[%c0_4, %c0_5] : memref<1x128xf32, #tpu.memory_space<vmem>>, vector<1x128xf32>
    %c0_6 = arith.constant 0 : index
    %c0_7 = arith.constant 0 : index
    %6 = vector.load %arg8[%c0_6, %c0_7] : memref<2x32xf32, #tpu.memory_space<vmem>>, vector<2x32xf32>
    %c0_8 = arith.constant 0 : index
    %c0_9 = arith.constant 0 : index
    %7 = vector.load %arg9[%c0_8, %c0_9] : memref<2x32xf32, #tpu.memory_space<vmem>>, vector<2x32xf32>
    %c0_10 = arith.constant 0 : index
    %c0_11 = arith.constant 0 : index
    %8 = vector.load %arg10[%c0_10, %c0_11] : memref<2x32xf32, #tpu.memory_space<vmem>>, vector<2x32xf32>
    %c0_12 = arith.constant 0 : index
    %c0_13 = arith.constant 0 : index
    %9 = vector.load %arg11[%c0_12, %c0_13] : memref<2x32xf32, #tpu.memory_space<vmem>>, vector<2x32xf32>
    %c0_i32_14 = arith.constant 0 : i32
    %10 = arith.index_cast %c0_i32_14 : i32 to index
    %c0_15 = arith.constant 0 : index
    %c0_16 = arith.constant 0 : index
    %11 = vector.load %arg1[%10, %c0_15, %c0_16] : memref<8x2x128xf32, #tpu.memory_space<vmem>>, vector<1x2x128xf32>
    %12 = vector.shape_cast %11 : vector<1x2x128xf32> to vector<2x128xf32>
    %cst = arith.constant dense<0.000000e+00> : vector<2x128xf32>
    %13 = tpu.matmul %6, %3, %cst {dimension_numbers = #tpu.dot_dimension_numbers<[1], [0], [0], [1], [0, 0, 1, 1], [], []>} : vector<2x32xf32>, vector<32x128xf32>, vector<2x128xf32> -> vector<2x128xf32>
    %14 = arith.addf %12, %13 : vector<2x128xf32>
    %15 = vector.extract_strided_slice %14 {offsets = [0, 0], sizes = [2, 32], strides = [1, 1]} : vector<2x128xf32> to vector<2x32xf32>
    %16 = arith.negf %15 : vector<2x32xf32>
    %17 = math.exp %16 : vector<2x32xf32>
    %cst_17 = arith.constant 1.000000e+00 : f32
    %18 = vector.broadcast %cst_17 : f32 to vector<2x32xf32>
    %19 = arith.addf %18, %17 : vector<2x32xf32>
    %20 = arith.divf %18, %19 : vector<2x32xf32>
    %21 = vector.extract_strided_slice %14 {offsets = [0, 32], sizes = [2, 32], strides = [1, 1]} : vector<2x128xf32> to vector<2x32xf32>
    %22 = arith.negf %21 : vector<2x32xf32>
    %23 = math.exp %22 : vector<2x32xf32>
    %cst_18 = arith.constant 1.000000e+00 : f32
    %24 = vector.broadcast %cst_18 : f32 to vector<2x32xf32>
    %25 = arith.addf %24, %23 : vector<2x32xf32>
    %26 = arith.divf %24, %25 : vector<2x32xf32>
    %27 = vector.extract_strided_slice %14 {offsets = [0, 64], sizes = [2, 32], strides = [1, 1]} : vector<2x128xf32> to vector<2x32xf32>
    %28 = math.tanh %27 : vector<2x32xf32>
    %29 = vector.extract_strided_slice %14 {offsets = [0, 96], sizes = [2, 32], strides = [1, 1]} : vector<2x128xf32> to vector<2x32xf32>
    %30 = arith.negf %29 : vector<2x32xf32>
    %31 = math.exp %30 : vector<2x32xf32>
    %cst_19 = arith.constant 1.000000e+00 : f32
    %32 = vector.broadcast %cst_19 : f32 to vector<2x32xf32>
    %33 = arith.addf %32, %31 : vector<2x32xf32>
    %34 = arith.divf %32, %33 : vector<2x32xf32>
    %35 = arith.mulf %26, %7 : vector<2x32xf32>
    %36 = arith.mulf %20, %28 : vector<2x32xf32>
    %37 = arith.addf %35, %36 : vector<2x32xf32>
    %38 = math.tanh %37 : vector<2x32xf32>
    %39 = arith.mulf %34, %38 : vector<2x32xf32>
    %40 = tpu.concatenate %39, %8 in 1 : vector<2x32xf32>, vector<2x32xf32> -> vector<2x64xf32>
    %cst_20 = arith.constant dense<0.000000e+00> : vector<2x128xf32>
    %41 = tpu.matmul %40, %4, %cst_20 {dimension_numbers = #tpu.dot_dimension_numbers<[1], [0], [0], [1], [0, 0, 1, 1], [], []>} : vector<2x64xf32>, vector<64x128xf32>, vector<2x128xf32> -> vector<2x128xf32>
    %42 = vector.broadcast %5 : vector<1x128xf32> to vector<2x128xf32>
    %43 = arith.addf %41, %42 : vector<2x128xf32>
    %44 = vector.extract_strided_slice %43 {offsets = [0, 0], sizes = [2, 32], strides = [1, 1]} : vector<2x128xf32> to vector<2x32xf32>
    %45 = arith.negf %44 : vector<2x32xf32>
    %46 = math.exp %45 : vector<2x32xf32>
    %cst_21 = arith.constant 1.000000e+00 : f32
    %47 = vector.broadcast %cst_21 : f32 to vector<2x32xf32>
    %48 = arith.addf %47, %46 : vector<2x32xf32>
    %49 = arith.divf %47, %48 : vector<2x32xf32>
    %50 = vector.extract_strided_slice %43 {offsets = [0, 32], sizes = [2, 32], strides = [1, 1]} : vector<2x128xf32> to vector<2x32xf32>
    %51 = arith.negf %50 : vector<2x32xf32>
    %52 = math.exp %51 : vector<2x32xf32>
    %cst_22 = arith.constant 1.000000e+00 : f32
    %53 = vector.broadcast %cst_22 : f32 to vector<2x32xf32>
    %54 = arith.addf %53, %52 : vector<2x32xf32>
    %55 = arith.divf %53, %54 : vector<2x32xf32>
    %56 = vector.extract_strided_slice %43 {offsets = [0, 64], sizes = [2, 32], strides = [1, 1]} : vector<2x128xf32> to vector<2x32xf32>
    %57 = math.tanh %56 : vector<2x32xf32>
    %58 = vector.extract_strided_slice %43 {offsets = [0, 96], sizes = [2, 32], strides = [1, 1]} : vector<2x128xf32> to vector<2x32xf32>
    %59 = arith.negf %58 : vector<2x32xf32>
    %60 = math.exp %59 : vector<2x32xf32>
    %cst_23 = arith.constant 1.000000e+00 : f32
    %61 = vector.broadcast %cst_23 : f32 to vector<2x32xf32>
    %62 = arith.addf %61, %60 : vector<2x32xf32>
    %63 = arith.divf %61, %62 : vector<2x32xf32>
    %64 = arith.mulf %55, %9 : vector<2x32xf32>
    %65 = arith.mulf %49, %57 : vector<2x32xf32>
    %66 = arith.addf %64, %65 : vector<2x32xf32>
    %67 = math.tanh %66 : vector<2x32xf32>
    %68 = arith.mulf %63, %67 : vector<2x32xf32>
    %c1_i32 = arith.constant 1 : i32
    %69 = arith.index_cast %c1_i32 : i32 to index
    %c0_24 = arith.constant 0 : index
    %c0_25 = arith.constant 0 : index
    %70 = vector.load %arg1[%69, %c0_24, %c0_25] : memref<8x2x128xf32, #tpu.memory_space<vmem>>, vector<1x2x128xf32>
    %71 = vector.shape_cast %70 : vector<1x2x128xf32> to vector<2x128xf32>
    %cst_26 = arith.constant dense<0.000000e+00> : vector<2x128xf32>
    %72 = tpu.matmul %39, %3, %cst_26 {dimension_numbers = #tpu.dot_dimension_numbers<[1], [0], [0], [1], [0, 0, 1, 1], [], []>} : vector<2x32xf32>, vector<32x128xf32>, vector<2x128xf32> -> vector<2x128xf32>
    %73 = arith.addf %71, %72 : vector<2x128xf32>
    %74 = vector.extract_strided_slice %73 {offsets = [0, 0], sizes = [2, 32], strides = [1, 1]} : vector<2x128xf32> to vector<2x32xf32>
    %75 = arith.negf %74 : vector<2x32xf32>
    %76 = math.exp %75 : vector<2x32xf32>
    %cst_27 = arith.constant 1.000000e+00 : f32
    %77 = vector.broadcast %cst_27 : f32 to vector<2x32xf32>
    %78 = arith.addf %77, %76 : vector<2x32xf32>
    %79 = arith.divf %77, %78 : vector<2x32xf32>
    %80 = vector.extract_strided_slice %73 {offsets = [0, 32], sizes = [2, 32], strides = [1, 1]} : vector<2x128xf32> to vector<2x32xf32>
    %81 = arith.negf %80 : vector<2x32xf32>
    %82 = math.exp %81 : vector<2x32xf32>
    %cst_28 = arith.constant 1.000000e+00 : f32
    %83 = vector.broadcast %cst_28 : f32 to vector<2x32xf32>
    %84 = arith.addf %83, %82 : vector<2x32xf32>
    %85 = arith.divf %83, %84 : vector<2x32xf32>
    %86 = vector.extract_strided_slice %73 {offsets = [0, 64], sizes = [2, 32], strides = [1, 1]} : vector<2x128xf32> to vector<2x32xf32>
    %87 = math.tanh %86 : vector<2x32xf32>
    %88 = vector.extract_strided_slice %73 {offsets = [0, 96], sizes = [2, 32], strides = [1, 1]} : vector<2x128xf32> to vector<2x32xf32>
    %89 = arith.negf %88 : vector<2x32xf32>
    %90 = math.exp %89 : vector<2x32xf32>
    %cst_29 = arith.constant 1.000000e+00 : f32
    %91 = vector.broadcast %cst_29 : f32 to vector<2x32xf32>
    %92 = arith.addf %91, %90 : vector<2x32xf32>
    %93 = arith.divf %91, %92 : vector<2x32xf32>
    %94 = arith.mulf %85, %37 : vector<2x32xf32>
    %95 = arith.mulf %79, %87 : vector<2x32xf32>
    %96 = arith.addf %94, %95 : vector<2x32xf32>
    %97 = math.tanh %96 : vector<2x32xf32>
    %98 = arith.mulf %93, %97 : vector<2x32xf32>
    %99 = tpu.concatenate %98, %68 in 1 : vector<2x32xf32>, vector<2x32xf32> -> vector<2x64xf32>
    %cst_30 = arith.constant dense<0.000000e+00> : vector<2x128xf32>
    %100 = tpu.matmul %99, %4, %cst_30 {dimension_numbers = #tpu.dot_dimension_numbers<[1], [0], [0], [1], [0, 0, 1, 1], [], []>} : vector<2x64xf32>, vector<64x128xf32>, vector<2x128xf32> -> vector<2x128xf32>
    %101 = vector.broadcast %5 : vector<1x128xf32> to vector<2x128xf32>
    %102 = arith.addf %100, %101 : vector<2x128xf32>
    %103 = vector.extract_strided_slice %102 {offsets = [0, 0], sizes = [2, 32], strides = [1, 1]} : vector<2x128xf32> to vector<2x32xf32>
    %104 = arith.negf %103 : vector<2x32xf32>
    %105 = math.exp %104 : vector<2x32xf32>
    %cst_31 = arith.constant 1.000000e+00 : f32
    %106 = vector.broadcast %cst_31 : f32 to vector<2x32xf32>
    %107 = arith.addf %106, %105 : vector<2x32xf32>
    %108 = arith.divf %106, %107 : vector<2x32xf32>
    %109 = vector.extract_strided_slice %102 {offsets = [0, 32], sizes = [2, 32], strides = [1, 1]} : vector<2x128xf32> to vector<2x32xf32>
    %110 = arith.negf %109 : vector<2x32xf32>
    %111 = math.exp %110 : vector<2x32xf32>
    %cst_32 = arith.constant 1.000000e+00 : f32
    %112 = vector.broadcast %cst_32 : f32 to vector<2x32xf32>
    %113 = arith.addf %112, %111 : vector<2x32xf32>
    %114 = arith.divf %112, %113 : vector<2x32xf32>
    %115 = vector.extract_strided_slice %102 {offsets = [0, 64], sizes = [2, 32], strides = [1, 1]} : vector<2x128xf32> to vector<2x32xf32>
    %116 = math.tanh %115 : vector<2x32xf32>
    %117 = vector.extract_strided_slice %102 {offsets = [0, 96], sizes = [2, 32], strides = [1, 1]} : vector<2x128xf32> to vector<2x32xf32>
    %118 = arith.negf %117 : vector<2x32xf32>
    %119 = math.exp %118 : vector<2x32xf32>
    %cst_33 = arith.constant 1.000000e+00 : f32
    %120 = vector.broadcast %cst_33 : f32 to vector<2x32xf32>
    %121 = arith.addf %120, %119 : vector<2x32xf32>
    %122 = arith.divf %120, %121 : vector<2x32xf32>
    %123 = arith.mulf %114, %66 : vector<2x32xf32>
    %124 = arith.mulf %108, %116 : vector<2x32xf32>
    %125 = arith.addf %123, %124 : vector<2x32xf32>
    %126 = math.tanh %125 : vector<2x32xf32>
    %127 = arith.mulf %122, %126 : vector<2x32xf32>
    %c2_i32 = arith.constant 2 : i32
    %128 = arith.index_cast %c2_i32 : i32 to index
    %c0_34 = arith.constant 0 : index
    %c0_35 = arith.constant 0 : index
    %129 = vector.load %arg1[%128, %c0_34, %c0_35] : memref<8x2x128xf32, #tpu.memory_space<vmem>>, vector<1x2x128xf32>
    %130 = vector.shape_cast %129 : vector<1x2x128xf32> to vector<2x128xf32>
    %cst_36 = arith.constant dense<0.000000e+00> : vector<2x128xf32>
    %131 = tpu.matmul %98, %3, %cst_36 {dimension_numbers = #tpu.dot_dimension_numbers<[1], [0], [0], [1], [0, 0, 1, 1], [], []>} : vector<2x32xf32>, vector<32x128xf32>, vector<2x128xf32> -> vector<2x128xf32>
    %132 = arith.addf %130, %131 : vector<2x128xf32>
    %133 = vector.extract_strided_slice %132 {offsets = [0, 0], sizes = [2, 32], strides = [1, 1]} : vector<2x128xf32> to vector<2x32xf32>
    %134 = arith.negf %133 : vector<2x32xf32>
    %135 = math.exp %134 : vector<2x32xf32>
    %cst_37 = arith.constant 1.000000e+00 : f32
    %136 = vector.broadcast %cst_37 : f32 to vector<2x32xf32>
    %137 = arith.addf %136, %135 : vector<2x32xf32>
    %138 = arith.divf %136, %137 : vector<2x32xf32>
    %139 = vector.extract_strided_slice %132 {offsets = [0, 32], sizes = [2, 32], strides = [1, 1]} : vector<2x128xf32> to vector<2x32xf32>
    %140 = arith.negf %139 : vector<2x32xf32>
    %141 = math.exp %140 : vector<2x32xf32>
    %cst_38 = arith.constant 1.000000e+00 : f32
    %142 = vector.broadcast %cst_38 : f32 to vector<2x32xf32>
    %143 = arith.addf %142, %141 : vector<2x32xf32>
    %144 = arith.divf %142, %143 : vector<2x32xf32>
    %145 = vector.extract_strided_slice %132 {offsets = [0, 64], sizes = [2, 32], strides = [1, 1]} : vector<2x128xf32> to vector<2x32xf32>
    %146 = math.tanh %145 : vector<2x32xf32>
    %147 = vector.extract_strided_slice %132 {offsets = [0, 96], sizes = [2, 32], strides = [1, 1]} : vector<2x128xf32> to vector<2x32xf32>
    %148 = arith.negf %147 : vector<2x32xf32>
    %149 = math.exp %148 : vector<2x32xf32>
    %cst_39 = arith.constant 1.000000e+00 : f32
    %150 = vector.broadcast %cst_39 : f32 to vector<2x32xf32>
    %151 = arith.addf %150, %149 : vector<2x32xf32>
    %152 = arith.divf %150, %151 : vector<2x32xf32>
    %153 = arith.mulf %144, %96 : vector<2x32xf32>
    %154 = arith.mulf %138, %146 : vector<2x32xf32>
    %155 = arith.addf %153, %154 : vector<2x32xf32>
    %156 = math.tanh %155 : vector<2x32xf32>
    %157 = arith.mulf %152, %156 : vector<2x32xf32>
    %158 = tpu.concatenate %157, %127 in 1 : vector<2x32xf32>, vector<2x32xf32> -> vector<2x64xf32>
    %cst_40 = arith.constant dense<0.000000e+00> : vector<2x128xf32>
    %159 = tpu.matmul %158, %4, %cst_40 {dimension_numbers = #tpu.dot_dimension_numbers<[1], [0], [0], [1], [0, 0, 1, 1], [], []>} : vector<2x64xf32>, vector<64x128xf32>, vector<2x128xf32> -> vector<2x128xf32>
    %160 = vector.broadcast %5 : vector<1x128xf32> to vector<2x128xf32>
    %161 = arith.addf %159, %160 : vector<2x128xf32>
    %162 = vector.extract_strided_slice %161 {offsets = [0, 0], sizes = [2, 32], strides = [1, 1]} : vector<2x128xf32> to vector<2x32xf32>
    %163 = arith.negf %162 : vector<2x32xf32>
    %164 = math.exp %163 : vector<2x32xf32>
    %cst_41 = arith.constant 1.000000e+00 : f32
    %165 = vector.broadcast %cst_41 : f32 to vector<2x32xf32>
    %166 = arith.addf %165, %164 : vector<2x32xf32>
    %167 = arith.divf %165, %166 : vector<2x32xf32>
    %168 = vector.extract_strided_slice %161 {offsets = [0, 32], sizes = [2, 32], strides = [1, 1]} : vector<2x128xf32> to vector<2x32xf32>
    %169 = arith.negf %168 : vector<2x32xf32>
    %170 = math.exp %169 : vector<2x32xf32>
    %cst_42 = arith.constant 1.000000e+00 : f32
    %171 = vector.broadcast %cst_42 : f32 to vector<2x32xf32>
    %172 = arith.addf %171, %170 : vector<2x32xf32>
    %173 = arith.divf %171, %172 : vector<2x32xf32>
    %174 = vector.extract_strided_slice %161 {offsets = [0, 64], sizes = [2, 32], strides = [1, 1]} : vector<2x128xf32> to vector<2x32xf32>
    %175 = math.tanh %174 : vector<2x32xf32>
    %176 = vector.extract_strided_slice %161 {offsets = [0, 96], sizes = [2, 32], strides = [1, 1]} : vector<2x128xf32> to vector<2x32xf32>
    %177 = arith.negf %176 : vector<2x32xf32>
    %178 = math.exp %177 : vector<2x32xf32>
    %cst_43 = arith.constant 1.000000e+00 : f32
    %179 = vector.broadcast %cst_43 : f32 to vector<2x32xf32>
    %180 = arith.addf %179, %178 : vector<2x32xf32>
    %181 = arith.divf %179, %180 : vector<2x32xf32>
    %182 = arith.mulf %173, %125 : vector<2x32xf32>
    %183 = arith.mulf %167, %175 : vector<2x32xf32>
    %184 = arith.addf %182, %183 : vector<2x32xf32>
    %185 = math.tanh %184 : vector<2x32xf32>
    %186 = arith.mulf %181, %185 : vector<2x32xf32>
    %c3_i32 = arith.constant 3 : i32
    %187 = arith.index_cast %c3_i32 : i32 to index
    %c0_44 = arith.constant 0 : index
    %c0_45 = arith.constant 0 : index
    %188 = vector.load %arg1[%187, %c0_44, %c0_45] : memref<8x2x128xf32, #tpu.memory_space<vmem>>, vector<1x2x128xf32>
    %189 = vector.shape_cast %188 : vector<1x2x128xf32> to vector<2x128xf32>
    %cst_46 = arith.constant dense<0.000000e+00> : vector<2x128xf32>
    %190 = tpu.matmul %157, %3, %cst_46 {dimension_numbers = #tpu.dot_dimension_numbers<[1], [0], [0], [1], [0, 0, 1, 1], [], []>} : vector<2x32xf32>, vector<32x128xf32>, vector<2x128xf32> -> vector<2x128xf32>
    %191 = arith.addf %189, %190 : vector<2x128xf32>
    %192 = vector.extract_strided_slice %191 {offsets = [0, 0], sizes = [2, 32], strides = [1, 1]} : vector<2x128xf32> to vector<2x32xf32>
    %193 = arith.negf %192 : vector<2x32xf32>
    %194 = math.exp %193 : vector<2x32xf32>
    %cst_47 = arith.constant 1.000000e+00 : f32
    %195 = vector.broadcast %cst_47 : f32 to vector<2x32xf32>
    %196 = arith.addf %195, %194 : vector<2x32xf32>
    %197 = arith.divf %195, %196 : vector<2x32xf32>
    %198 = vector.extract_strided_slice %191 {offsets = [0, 32], sizes = [2, 32], strides = [1, 1]} : vector<2x128xf32> to vector<2x32xf32>
    %199 = arith.negf %198 : vector<2x32xf32>
    %200 = math.exp %199 : vector<2x32xf32>
    %cst_48 = arith.constant 1.000000e+00 : f32
    %201 = vector.broadcast %cst_48 : f32 to vector<2x32xf32>
    %202 = arith.addf %201, %200 : vector<2x32xf32>
    %203 = arith.divf %201, %202 : vector<2x32xf32>
    %204 = vector.extract_strided_slice %191 {offsets = [0, 64], sizes = [2, 32], strides = [1, 1]} : vector<2x128xf32> to vector<2x32xf32>
    %205 = math.tanh %204 : vector<2x32xf32>
    %206 = vector.extract_strided_slice %191 {offsets = [0, 96], sizes = [2, 32], strides = [1, 1]} : vector<2x128xf32> to vector<2x32xf32>
    %207 = arith.negf %206 : vector<2x32xf32>
    %208 = math.exp %207 : vector<2x32xf32>
    %cst_49 = arith.constant 1.000000e+00 : f32
    %209 = vector.broadcast %cst_49 : f32 to vector<2x32xf32>
    %210 = arith.addf %209, %208 : vector<2x32xf32>
    %211 = arith.divf %209, %210 : vector<2x32xf32>
    %212 = arith.mulf %203, %155 : vector<2x32xf32>
    %213 = arith.mulf %197, %205 : vector<2x32xf32>
    %214 = arith.addf %212, %213 : vector<2x32xf32>
    %215 = math.tanh %214 : vector<2x32xf32>
    %216 = arith.mulf %211, %215 : vector<2x32xf32>
    %217 = tpu.concatenate %216, %186 in 1 : vector<2x32xf32>, vector<2x32xf32> -> vector<2x64xf32>
    %cst_50 = arith.constant dense<0.000000e+00> : vector<2x128xf32>
    %218 = tpu.matmul %217, %4, %cst_50 {dimension_numbers = #tpu.dot_dimension_numbers<[1], [0], [0], [1], [0, 0, 1, 1], [], []>} : vector<2x64xf32>, vector<64x128xf32>, vector<2x128xf32> -> vector<2x128xf32>
    %219 = vector.broadcast %5 : vector<1x128xf32> to vector<2x128xf32>
    %220 = arith.addf %218, %219 : vector<2x128xf32>
    %221 = vector.extract_strided_slice %220 {offsets = [0, 0], sizes = [2, 32], strides = [1, 1]} : vector<2x128xf32> to vector<2x32xf32>
    %222 = arith.negf %221 : vector<2x32xf32>
    %223 = math.exp %222 : vector<2x32xf32>
    %cst_51 = arith.constant 1.000000e+00 : f32
    %224 = vector.broadcast %cst_51 : f32 to vector<2x32xf32>
    %225 = arith.addf %224, %223 : vector<2x32xf32>
    %226 = arith.divf %224, %225 : vector<2x32xf32>
    %227 = vector.extract_strided_slice %220 {offsets = [0, 32], sizes = [2, 32], strides = [1, 1]} : vector<2x128xf32> to vector<2x32xf32>
    %228 = arith.negf %227 : vector<2x32xf32>
    %229 = math.exp %228 : vector<2x32xf32>
    %cst_52 = arith.constant 1.000000e+00 : f32
    %230 = vector.broadcast %cst_52 : f32 to vector<2x32xf32>
    %231 = arith.addf %230, %229 : vector<2x32xf32>
    %232 = arith.divf %230, %231 : vector<2x32xf32>
    %233 = vector.extract_strided_slice %220 {offsets = [0, 64], sizes = [2, 32], strides = [1, 1]} : vector<2x128xf32> to vector<2x32xf32>
    %234 = math.tanh %233 : vector<2x32xf32>
    %235 = vector.extract_strided_slice %220 {offsets = [0, 96], sizes = [2, 32], strides = [1, 1]} : vector<2x128xf32> to vector<2x32xf32>
    %236 = arith.negf %235 : vector<2x32xf32>
    %237 = math.exp %236 : vector<2x32xf32>
    %cst_53 = arith.constant 1.000000e+00 : f32
    %238 = vector.broadcast %cst_53 : f32 to vector<2x32xf32>
    %239 = arith.addf %238, %237 : vector<2x32xf32>
    %240 = arith.divf %238, %239 : vector<2x32xf32>
    %241 = arith.mulf %232, %184 : vector<2x32xf32>
    %242 = arith.mulf %226, %234 : vector<2x32xf32>
    %243 = arith.addf %241, %242 : vector<2x32xf32>
    %244 = math.tanh %243 : vector<2x32xf32>
    %245 = arith.mulf %240, %244 : vector<2x32xf32>
    %c4_i32 = arith.constant 4 : i32
    %246 = arith.index_cast %c4_i32 : i32 to index
    %c0_54 = arith.constant 0 : index
    %c0_55 = arith.constant 0 : index
    %247 = vector.load %arg1[%246, %c0_54, %c0_55] : memref<8x2x128xf32, #tpu.memory_space<vmem>>, vector<1x2x128xf32>
    %248 = vector.shape_cast %247 : vector<1x2x128xf32> to vector<2x128xf32>
    %cst_56 = arith.constant dense<0.000000e+00> : vector<2x128xf32>
    %249 = tpu.matmul %216, %3, %cst_56 {dimension_numbers = #tpu.dot_dimension_numbers<[1], [0], [0], [1], [0, 0, 1, 1], [], []>} : vector<2x32xf32>, vector<32x128xf32>, vector<2x128xf32> -> vector<2x128xf32>
    %250 = arith.addf %248, %249 : vector<2x128xf32>
    %251 = vector.extract_strided_slice %250 {offsets = [0, 0], sizes = [2, 32], strides = [1, 1]} : vector<2x128xf32> to vector<2x32xf32>
    %252 = arith.negf %251 : vector<2x32xf32>
    %253 = math.exp %252 : vector<2x32xf32>
    %cst_57 = arith.constant 1.000000e+00 : f32
    %254 = vector.broadcast %cst_57 : f32 to vector<2x32xf32>
    %255 = arith.addf %254, %253 : vector<2x32xf32>
    %256 = arith.divf %254, %255 : vector<2x32xf32>
    %257 = vector.extract_strided_slice %250 {offsets = [0, 32], sizes = [2, 32], strides = [1, 1]} : vector<2x128xf32> to vector<2x32xf32>
    %258 = arith.negf %257 : vector<2x32xf32>
    %259 = math.exp %258 : vector<2x32xf32>
    %cst_58 = arith.constant 1.000000e+00 : f32
    %260 = vector.broadcast %cst_58 : f32 to vector<2x32xf32>
    %261 = arith.addf %260, %259 : vector<2x32xf32>
    %262 = arith.divf %260, %261 : vector<2x32xf32>
    %263 = vector.extract_strided_slice %250 {offsets = [0, 64], sizes = [2, 32], strides = [1, 1]} : vector<2x128xf32> to vector<2x32xf32>
    %264 = math.tanh %263 : vector<2x32xf32>
    %265 = vector.extract_strided_slice %250 {offsets = [0, 96], sizes = [2, 32], strides = [1, 1]} : vector<2x128xf32> to vector<2x32xf32>
    %266 = arith.negf %265 : vector<2x32xf32>
    %267 = math.exp %266 : vector<2x32xf32>
    %cst_59 = arith.constant 1.000000e+00 : f32
    %268 = vector.broadcast %cst_59 : f32 to vector<2x32xf32>
    %269 = arith.addf %268, %267 : vector<2x32xf32>
    %270 = arith.divf %268, %269 : vector<2x32xf32>
    %271 = arith.mulf %262, %214 : vector<2x32xf32>
    %272 = arith.mulf %256, %264 : vector<2x32xf32>
    %273 = arith.addf %271, %272 : vector<2x32xf32>
    %274 = math.tanh %273 : vector<2x32xf32>
    %275 = arith.mulf %270, %274 : vector<2x32xf32>
    %276 = tpu.concatenate %275, %245 in 1 : vector<2x32xf32>, vector<2x32xf32> -> vector<2x64xf32>
    %cst_60 = arith.constant dense<0.000000e+00> : vector<2x128xf32>
    %277 = tpu.matmul %276, %4, %cst_60 {dimension_numbers = #tpu.dot_dimension_numbers<[1], [0], [0], [1], [0, 0, 1, 1], [], []>} : vector<2x64xf32>, vector<64x128xf32>, vector<2x128xf32> -> vector<2x128xf32>
    %278 = vector.broadcast %5 : vector<1x128xf32> to vector<2x128xf32>
    %279 = arith.addf %277, %278 : vector<2x128xf32>
    %280 = vector.extract_strided_slice %279 {offsets = [0, 0], sizes = [2, 32], strides = [1, 1]} : vector<2x128xf32> to vector<2x32xf32>
    %281 = arith.negf %280 : vector<2x32xf32>
    %282 = math.exp %281 : vector<2x32xf32>
    %cst_61 = arith.constant 1.000000e+00 : f32
    %283 = vector.broadcast %cst_61 : f32 to vector<2x32xf32>
    %284 = arith.addf %283, %282 : vector<2x32xf32>
    %285 = arith.divf %283, %284 : vector<2x32xf32>
    %286 = vector.extract_strided_slice %279 {offsets = [0, 32], sizes = [2, 32], strides = [1, 1]} : vector<2x128xf32> to vector<2x32xf32>
    %287 = arith.negf %286 : vector<2x32xf32>
    %288 = math.exp %287 : vector<2x32xf32>
    %cst_62 = arith.constant 1.000000e+00 : f32
    %289 = vector.broadcast %cst_62 : f32 to vector<2x32xf32>
    %290 = arith.addf %289, %288 : vector<2x32xf32>
    %291 = arith.divf %289, %290 : vector<2x32xf32>
    %292 = vector.extract_strided_slice %279 {offsets = [0, 64], sizes = [2, 32], strides = [1, 1]} : vector<2x128xf32> to vector<2x32xf32>
    %293 = math.tanh %292 : vector<2x32xf32>
    %294 = vector.extract_strided_slice %279 {offsets = [0, 96], sizes = [2, 32], strides = [1, 1]} : vector<2x128xf32> to vector<2x32xf32>
    %295 = arith.negf %294 : vector<2x32xf32>
    %296 = math.exp %295 : vector<2x32xf32>
    %cst_63 = arith.constant 1.000000e+00 : f32
    %297 = vector.broadcast %cst_63 : f32 to vector<2x32xf32>
    %298 = arith.addf %297, %296 : vector<2x32xf32>
    %299 = arith.divf %297, %298 : vector<2x32xf32>
    %300 = arith.mulf %291, %243 : vector<2x32xf32>
    %301 = arith.mulf %285, %293 : vector<2x32xf32>
    %302 = arith.addf %300, %301 : vector<2x32xf32>
    %303 = math.tanh %302 : vector<2x32xf32>
    %304 = arith.mulf %299, %303 : vector<2x32xf32>
    %c5_i32 = arith.constant 5 : i32
    %305 = arith.index_cast %c5_i32 : i32 to index
    %c0_64 = arith.constant 0 : index
    %c0_65 = arith.constant 0 : index
    %306 = vector.load %arg1[%305, %c0_64, %c0_65] : memref<8x2x128xf32, #tpu.memory_space<vmem>>, vector<1x2x128xf32>
    %307 = vector.shape_cast %306 : vector<1x2x128xf32> to vector<2x128xf32>
    %cst_66 = arith.constant dense<0.000000e+00> : vector<2x128xf32>
    %308 = tpu.matmul %275, %3, %cst_66 {dimension_numbers = #tpu.dot_dimension_numbers<[1], [0], [0], [1], [0, 0, 1, 1], [], []>} : vector<2x32xf32>, vector<32x128xf32>, vector<2x128xf32> -> vector<2x128xf32>
    %309 = arith.addf %307, %308 : vector<2x128xf32>
    %310 = vector.extract_strided_slice %309 {offsets = [0, 0], sizes = [2, 32], strides = [1, 1]} : vector<2x128xf32> to vector<2x32xf32>
    %311 = arith.negf %310 : vector<2x32xf32>
    %312 = math.exp %311 : vector<2x32xf32>
    %cst_67 = arith.constant 1.000000e+00 : f32
    %313 = vector.broadcast %cst_67 : f32 to vector<2x32xf32>
    %314 = arith.addf %313, %312 : vector<2x32xf32>
    %315 = arith.divf %313, %314 : vector<2x32xf32>
    %316 = vector.extract_strided_slice %309 {offsets = [0, 32], sizes = [2, 32], strides = [1, 1]} : vector<2x128xf32> to vector<2x32xf32>
    %317 = arith.negf %316 : vector<2x32xf32>
    %318 = math.exp %317 : vector<2x32xf32>
    %cst_68 = arith.constant 1.000000e+00 : f32
    %319 = vector.broadcast %cst_68 : f32 to vector<2x32xf32>
    %320 = arith.addf %319, %318 : vector<2x32xf32>
    %321 = arith.divf %319, %320 : vector<2x32xf32>
    %322 = vector.extract_strided_slice %309 {offsets = [0, 64], sizes = [2, 32], strides = [1, 1]} : vector<2x128xf32> to vector<2x32xf32>
    %323 = math.tanh %322 : vector<2x32xf32>
    %324 = vector.extract_strided_slice %309 {offsets = [0, 96], sizes = [2, 32], strides = [1, 1]} : vector<2x128xf32> to vector<2x32xf32>
    %325 = arith.negf %324 : vector<2x32xf32>
    %326 = math.exp %325 : vector<2x32xf32>
    %cst_69 = arith.constant 1.000000e+00 : f32
    %327 = vector.broadcast %cst_69 : f32 to vector<2x32xf32>
    %328 = arith.addf %327, %326 : vector<2x32xf32>
    %329 = arith.divf %327, %328 : vector<2x32xf32>
    %330 = arith.mulf %321, %273 : vector<2x32xf32>
    %331 = arith.mulf %315, %323 : vector<2x32xf32>
    %332 = arith.addf %330, %331 : vector<2x32xf32>
    %333 = math.tanh %332 : vector<2x32xf32>
    %334 = arith.mulf %329, %333 : vector<2x32xf32>
    %335 = tpu.concatenate %334, %304 in 1 : vector<2x32xf32>, vector<2x32xf32> -> vector<2x64xf32>
    %cst_70 = arith.constant dense<0.000000e+00> : vector<2x128xf32>
    %336 = tpu.matmul %335, %4, %cst_70 {dimension_numbers = #tpu.dot_dimension_numbers<[1], [0], [0], [1], [0, 0, 1, 1], [], []>} : vector<2x64xf32>, vector<64x128xf32>, vector<2x128xf32> -> vector<2x128xf32>
    %337 = vector.broadcast %5 : vector<1x128xf32> to vector<2x128xf32>
    %338 = arith.addf %336, %337 : vector<2x128xf32>
    %339 = vector.extract_strided_slice %338 {offsets = [0, 0], sizes = [2, 32], strides = [1, 1]} : vector<2x128xf32> to vector<2x32xf32>
    %340 = arith.negf %339 : vector<2x32xf32>
    %341 = math.exp %340 : vector<2x32xf32>
    %cst_71 = arith.constant 1.000000e+00 : f32
    %342 = vector.broadcast %cst_71 : f32 to vector<2x32xf32>
    %343 = arith.addf %342, %341 : vector<2x32xf32>
    %344 = arith.divf %342, %343 : vector<2x32xf32>
    %345 = vector.extract_strided_slice %338 {offsets = [0, 32], sizes = [2, 32], strides = [1, 1]} : vector<2x128xf32> to vector<2x32xf32>
    %346 = arith.negf %345 : vector<2x32xf32>
    %347 = math.exp %346 : vector<2x32xf32>
    %cst_72 = arith.constant 1.000000e+00 : f32
    %348 = vector.broadcast %cst_72 : f32 to vector<2x32xf32>
    %349 = arith.addf %348, %347 : vector<2x32xf32>
    %350 = arith.divf %348, %349 : vector<2x32xf32>
    %351 = vector.extract_strided_slice %338 {offsets = [0, 64], sizes = [2, 32], strides = [1, 1]} : vector<2x128xf32> to vector<2x32xf32>
    %352 = math.tanh %351 : vector<2x32xf32>
    %353 = vector.extract_strided_slice %338 {offsets = [0, 96], sizes = [2, 32], strides = [1, 1]} : vector<2x128xf32> to vector<2x32xf32>
    %354 = arith.negf %353 : vector<2x32xf32>
    %355 = math.exp %354 : vector<2x32xf32>
    %cst_73 = arith.constant 1.000000e+00 : f32
    %356 = vector.broadcast %cst_73 : f32 to vector<2x32xf32>
    %357 = arith.addf %356, %355 : vector<2x32xf32>
    %358 = arith.divf %356, %357 : vector<2x32xf32>
    %359 = arith.mulf %350, %302 : vector<2x32xf32>
    %360 = arith.mulf %344, %352 : vector<2x32xf32>
    %361 = arith.addf %359, %360 : vector<2x32xf32>
    %362 = math.tanh %361 : vector<2x32xf32>
    %363 = arith.mulf %358, %362 : vector<2x32xf32>
    %c6_i32 = arith.constant 6 : i32
    %364 = arith.index_cast %c6_i32 : i32 to index
    %c0_74 = arith.constant 0 : index
    %c0_75 = arith.constant 0 : index
    %365 = vector.load %arg1[%364, %c0_74, %c0_75] : memref<8x2x128xf32, #tpu.memory_space<vmem>>, vector<1x2x128xf32>
    %366 = vector.shape_cast %365 : vector<1x2x128xf32> to vector<2x128xf32>
    %cst_76 = arith.constant dense<0.000000e+00> : vector<2x128xf32>
    %367 = tpu.matmul %334, %3, %cst_76 {dimension_numbers = #tpu.dot_dimension_numbers<[1], [0], [0], [1], [0, 0, 1, 1], [], []>} : vector<2x32xf32>, vector<32x128xf32>, vector<2x128xf32> -> vector<2x128xf32>
    %368 = arith.addf %366, %367 : vector<2x128xf32>
    %369 = vector.extract_strided_slice %368 {offsets = [0, 0], sizes = [2, 32], strides = [1, 1]} : vector<2x128xf32> to vector<2x32xf32>
    %370 = arith.negf %369 : vector<2x32xf32>
    %371 = math.exp %370 : vector<2x32xf32>
    %cst_77 = arith.constant 1.000000e+00 : f32
    %372 = vector.broadcast %cst_77 : f32 to vector<2x32xf32>
    %373 = arith.addf %372, %371 : vector<2x32xf32>
    %374 = arith.divf %372, %373 : vector<2x32xf32>
    %375 = vector.extract_strided_slice %368 {offsets = [0, 32], sizes = [2, 32], strides = [1, 1]} : vector<2x128xf32> to vector<2x32xf32>
    %376 = arith.negf %375 : vector<2x32xf32>
    %377 = math.exp %376 : vector<2x32xf32>
    %cst_78 = arith.constant 1.000000e+00 : f32
    %378 = vector.broadcast %cst_78 : f32 to vector<2x32xf32>
    %379 = arith.addf %378, %377 : vector<2x32xf32>
    %380 = arith.divf %378, %379 : vector<2x32xf32>
    %381 = vector.extract_strided_slice %368 {offsets = [0, 64], sizes = [2, 32], strides = [1, 1]} : vector<2x128xf32> to vector<2x32xf32>
    %382 = math.tanh %381 : vector<2x32xf32>
    %383 = vector.extract_strided_slice %368 {offsets = [0, 96], sizes = [2, 32], strides = [1, 1]} : vector<2x128xf32> to vector<2x32xf32>
    %384 = arith.negf %383 : vector<2x32xf32>
    %385 = math.exp %384 : vector<2x32xf32>
    %cst_79 = arith.constant 1.000000e+00 : f32
    %386 = vector.broadcast %cst_79 : f32 to vector<2x32xf32>
    %387 = arith.addf %386, %385 : vector<2x32xf32>
    %388 = arith.divf %386, %387 : vector<2x32xf32>
    %389 = arith.mulf %380, %332 : vector<2x32xf32>
    %390 = arith.mulf %374, %382 : vector<2x32xf32>
    %391 = arith.addf %389, %390 : vector<2x32xf32>
    %392 = math.tanh %391 : vector<2x32xf32>
    %393 = arith.mulf %388, %392 : vector<2x32xf32>
    %394 = tpu.concatenate %393, %363 in 1 : vector<2x32xf32>, vector<2x32xf32> -> vector<2x64xf32>
    %cst_80 = arith.constant dense<0.000000e+00> : vector<2x128xf32>
    %395 = tpu.matmul %394, %4, %cst_80 {dimension_numbers = #tpu.dot_dimension_numbers<[1], [0], [0], [1], [0, 0, 1, 1], [], []>} : vector<2x64xf32>, vector<64x128xf32>, vector<2x128xf32> -> vector<2x128xf32>
    %396 = vector.broadcast %5 : vector<1x128xf32> to vector<2x128xf32>
    %397 = arith.addf %395, %396 : vector<2x128xf32>
    %398 = vector.extract_strided_slice %397 {offsets = [0, 0], sizes = [2, 32], strides = [1, 1]} : vector<2x128xf32> to vector<2x32xf32>
    %399 = arith.negf %398 : vector<2x32xf32>
    %400 = math.exp %399 : vector<2x32xf32>
    %cst_81 = arith.constant 1.000000e+00 : f32
    %401 = vector.broadcast %cst_81 : f32 to vector<2x32xf32>
    %402 = arith.addf %401, %400 : vector<2x32xf32>
    %403 = arith.divf %401, %402 : vector<2x32xf32>
    %404 = vector.extract_strided_slice %397 {offsets = [0, 32], sizes = [2, 32], strides = [1, 1]} : vector<2x128xf32> to vector<2x32xf32>
    %405 = arith.negf %404 : vector<2x32xf32>
    %406 = math.exp %405 : vector<2x32xf32>
    %cst_82 = arith.constant 1.000000e+00 : f32
    %407 = vector.broadcast %cst_82 : f32 to vector<2x32xf32>
    %408 = arith.addf %407, %406 : vector<2x32xf32>
    %409 = arith.divf %407, %408 : vector<2x32xf32>
    %410 = vector.extract_strided_slice %397 {offsets = [0, 64], sizes = [2, 32], strides = [1, 1]} : vector<2x128xf32> to vector<2x32xf32>
    %411 = math.tanh %410 : vector<2x32xf32>
    %412 = vector.extract_strided_slice %397 {offsets = [0, 96], sizes = [2, 32], strides = [1, 1]} : vector<2x128xf32> to vector<2x32xf32>
    %413 = arith.negf %412 : vector<2x32xf32>
    %414 = math.exp %413 : vector<2x32xf32>
    %cst_83 = arith.constant 1.000000e+00 : f32
    %415 = vector.broadcast %cst_83 : f32 to vector<2x32xf32>
    %416 = arith.addf %415, %414 : vector<2x32xf32>
    %417 = arith.divf %415, %416 : vector<2x32xf32>
    %418 = arith.mulf %409, %361 : vector<2x32xf32>
    %419 = arith.mulf %403, %411 : vector<2x32xf32>
    %420 = arith.addf %418, %419 : vector<2x32xf32>
    %421 = math.tanh %420 : vector<2x32xf32>
    %422 = arith.mulf %417, %421 : vector<2x32xf32>
    %c7_i32 = arith.constant 7 : i32
    %423 = arith.index_cast %c7_i32 : i32 to index
    %c0_84 = arith.constant 0 : index
    %c0_85 = arith.constant 0 : index
    %424 = vector.load %arg1[%423, %c0_84, %c0_85] : memref<8x2x128xf32, #tpu.memory_space<vmem>>, vector<1x2x128xf32>
    %425 = vector.shape_cast %424 : vector<1x2x128xf32> to vector<2x128xf32>
    %cst_86 = arith.constant dense<0.000000e+00> : vector<2x128xf32>
    %426 = tpu.matmul %393, %3, %cst_86 {dimension_numbers = #tpu.dot_dimension_numbers<[1], [0], [0], [1], [0, 0, 1, 1], [], []>} : vector<2x32xf32>, vector<32x128xf32>, vector<2x128xf32> -> vector<2x128xf32>
    %427 = arith.addf %425, %426 : vector<2x128xf32>
    %428 = vector.extract_strided_slice %427 {offsets = [0, 0], sizes = [2, 32], strides = [1, 1]} : vector<2x128xf32> to vector<2x32xf32>
    %429 = arith.negf %428 : vector<2x32xf32>
    %430 = math.exp %429 : vector<2x32xf32>
    %cst_87 = arith.constant 1.000000e+00 : f32
    %431 = vector.broadcast %cst_87 : f32 to vector<2x32xf32>
    %432 = arith.addf %431, %430 : vector<2x32xf32>
    %433 = arith.divf %431, %432 : vector<2x32xf32>
    %434 = vector.extract_strided_slice %427 {offsets = [0, 32], sizes = [2, 32], strides = [1, 1]} : vector<2x128xf32> to vector<2x32xf32>
    %435 = arith.negf %434 : vector<2x32xf32>
    %436 = math.exp %435 : vector<2x32xf32>
    %cst_88 = arith.constant 1.000000e+00 : f32
    %437 = vector.broadcast %cst_88 : f32 to vector<2x32xf32>
    %438 = arith.addf %437, %436 : vector<2x32xf32>
    %439 = arith.divf %437, %438 : vector<2x32xf32>
    %440 = vector.extract_strided_slice %427 {offsets = [0, 64], sizes = [2, 32], strides = [1, 1]} : vector<2x128xf32> to vector<2x32xf32>
    %441 = math.tanh %440 : vector<2x32xf32>
    %442 = vector.extract_strided_slice %427 {offsets = [0, 96], sizes = [2, 32], strides = [1, 1]} : vector<2x128xf32> to vector<2x32xf32>
    %443 = arith.negf %442 : vector<2x32xf32>
    %444 = math.exp %443 : vector<2x32xf32>
    %cst_89 = arith.constant 1.000000e+00 : f32
    %445 = vector.broadcast %cst_89 : f32 to vector<2x32xf32>
    %446 = arith.addf %445, %444 : vector<2x32xf32>
    %447 = arith.divf %445, %446 : vector<2x32xf32>
    %448 = arith.mulf %439, %391 : vector<2x32xf32>
    %449 = arith.mulf %433, %441 : vector<2x32xf32>
    %450 = arith.addf %448, %449 : vector<2x32xf32>
    %451 = math.tanh %450 : vector<2x32xf32>
    %452 = arith.mulf %447, %451 : vector<2x32xf32>
    %453 = tpu.concatenate %452, %422 in 1 : vector<2x32xf32>, vector<2x32xf32> -> vector<2x64xf32>
    %cst_90 = arith.constant dense<0.000000e+00> : vector<2x128xf32>
    %454 = tpu.matmul %453, %4, %cst_90 {dimension_numbers = #tpu.dot_dimension_numbers<[1], [0], [0], [1], [0, 0, 1, 1], [], []>} : vector<2x64xf32>, vector<64x128xf32>, vector<2x128xf32> -> vector<2x128xf32>
    %455 = vector.broadcast %5 : vector<1x128xf32> to vector<2x128xf32>
    %456 = arith.addf %454, %455 : vector<2x128xf32>
    %457 = vector.extract_strided_slice %456 {offsets = [0, 0], sizes = [2, 32], strides = [1, 1]} : vector<2x128xf32> to vector<2x32xf32>
    %458 = arith.negf %457 : vector<2x32xf32>
    %459 = math.exp %458 : vector<2x32xf32>
    %cst_91 = arith.constant 1.000000e+00 : f32
    %460 = vector.broadcast %cst_91 : f32 to vector<2x32xf32>
    %461 = arith.addf %460, %459 : vector<2x32xf32>
    %462 = arith.divf %460, %461 : vector<2x32xf32>
    %463 = vector.extract_strided_slice %456 {offsets = [0, 32], sizes = [2, 32], strides = [1, 1]} : vector<2x128xf32> to vector<2x32xf32>
    %464 = arith.negf %463 : vector<2x32xf32>
    %465 = math.exp %464 : vector<2x32xf32>
    %cst_92 = arith.constant 1.000000e+00 : f32
    %466 = vector.broadcast %cst_92 : f32 to vector<2x32xf32>
    %467 = arith.addf %466, %465 : vector<2x32xf32>
    %468 = arith.divf %466, %467 : vector<2x32xf32>
    %469 = vector.extract_strided_slice %456 {offsets = [0, 64], sizes = [2, 32], strides = [1, 1]} : vector<2x128xf32> to vector<2x32xf32>
    %470 = math.tanh %469 : vector<2x32xf32>
    %471 = vector.extract_strided_slice %456 {offsets = [0, 96], sizes = [2, 32], strides = [1, 1]} : vector<2x128xf32> to vector<2x32xf32>
    %472 = arith.negf %471 : vector<2x32xf32>
    %473 = math.exp %472 : vector<2x32xf32>
    %cst_93 = arith.constant 1.000000e+00 : f32
    %474 = vector.broadcast %cst_93 : f32 to vector<2x32xf32>
    %475 = arith.addf %474, %473 : vector<2x32xf32>
    %476 = arith.divf %474, %475 : vector<2x32xf32>
    %477 = arith.mulf %468, %420 : vector<2x32xf32>
    %478 = arith.mulf %462, %470 : vector<2x32xf32>
    %479 = arith.addf %477, %478 : vector<2x32xf32>
    %480 = math.tanh %479 : vector<2x32xf32>
    %481 = arith.mulf %476, %480 : vector<2x32xf32>
    %c8_i32 = arith.constant 8 : i32
    %c0_94 = arith.constant 0 : index
    %c0_95 = arith.constant 0 : index
    %482 = vector.load %arg8[%c0_94, %c0_95] : memref<2x32xf32, #tpu.memory_space<vmem>>, vector<2x32xf32>
    tpu.vector_store %arg8[%c0_94, %c0_95], %452 {strides = array<i32>} : memref<2x32xf32, #tpu.memory_space<vmem>>, vector<2x32xf32>,
    %c0_96 = arith.constant 0 : index
    %c0_97 = arith.constant 0 : index
    %483 = vector.load %arg9[%c0_96, %c0_97] : memref<2x32xf32, #tpu.memory_space<vmem>>, vector<2x32xf32>
    tpu.vector_store %arg9[%c0_96, %c0_97], %450 {strides = array<i32>} : memref<2x32xf32, #tpu.memory_space<vmem>>, vector<2x32xf32>,
    %c0_98 = arith.constant 0 : index
    %c0_99 = arith.constant 0 : index
    %484 = vector.load %arg10[%c0_98, %c0_99] : memref<2x32xf32, #tpu.memory_space<vmem>>, vector<2x32xf32>
    tpu.vector_store %arg10[%c0_98, %c0_99], %481 {strides = array<i32>} : memref<2x32xf32, #tpu.memory_space<vmem>>, vector<2x32xf32>,
    %c0_100 = arith.constant 0 : index
    %c0_101 = arith.constant 0 : index
    %485 = vector.load %arg11[%c0_100, %c0_101] : memref<2x32xf32, #tpu.memory_space<vmem>>, vector<2x32xf32>
    tpu.vector_store %arg11[%c0_100, %c0_101], %479 {strides = array<i32>} : memref<2x32xf32, #tpu.memory_space<vmem>>, vector<2x32xf32>,
    %c0_i32_102 = arith.constant 0 : i32
    %486 = arith.cmpi eq, %arg0, %c0_i32_102 : i32
    %487 = arith.extui %486 : i1 to i32
    %c0_i32_103 = arith.constant 0 : i32
    %488 = arith.cmpi ne, %487, %c0_i32_103 : i32
    scf.if %488 {
      %c0_104 = arith.constant 0 : index
      %c0_105 = arith.constant 0 : index
      %489 = vector.load %arg5[%c0_104, %c0_105] : memref<32x6xf32, #tpu.memory_space<vmem>>, vector<32x6xf32>
      %cst_106 = arith.constant dense<0.000000e+00> : vector<2x6xf32>
      %490 = tpu.matmul %481, %489, %cst_106 {dimension_numbers = #tpu.dot_dimension_numbers<[1], [0], [0], [1], [0, 0, 1, 1], [], []>} : vector<2x32xf32>, vector<32x6xf32>, vector<2x6xf32> -> vector<2x6xf32>
      %c0_107 = arith.constant 0 : index
      %c0_108 = arith.constant 0 : index
      %491 = vector.load %arg6[%c0_107, %c0_108] : memref<1x6xf32, #tpu.memory_space<vmem>>, vector<1x6xf32>
      %492 = vector.broadcast %491 : vector<1x6xf32> to vector<2x6xf32>
      %493 = arith.addf %490, %492 : vector<2x6xf32>
      %c0_109 = arith.constant 0 : index
      %c0_110 = arith.constant 0 : index
      %494 = vector.load %arg7[%c0_109, %c0_110] : memref<2x6xf32, #tpu.memory_space<vmem>>, vector<2x6xf32>
      tpu.vector_store %arg7[%c0_109, %c0_110], %493 {strides = array<i32>} : memref<2x6xf32, #tpu.memory_space<vmem>>, vector<2x6xf32>,
    } else {
    }
    return
  }
  func.func @transform_0(%arg0: i32) -> (i32, i32, i32) {
    %c0_i32 = arith.constant 0 : i32
    %c0_i32_0 = arith.constant 0 : i32
    %c0_i32_1 = arith.constant 0 : i32
    return %arg0, %c0_i32, %c0_i32_0 : i32, i32, i32
  }
  func.func @transform_1(%arg0: i32) -> (i32, i32) {
    %c0_i32 = arith.constant 0 : i32
    %c0_i32_0 = arith.constant 0 : i32
    %c0_i32_1 = arith.constant 0 : i32
    return %c0_i32, %c0_i32_0 : i32, i32
  }
  func.func @transform_2(%arg0: i32) -> (i32, i32) {
    %c0_i32 = arith.constant 0 : i32
    %c0_i32_0 = arith.constant 0 : i32
    %c0_i32_1 = arith.constant 0 : i32
    return %c0_i32, %c0_i32_0 : i32, i32
  }
  func.func @transform_3(%arg0: i32) -> (i32, i32) {
    %c0_i32 = arith.constant 0 : i32
    %c0_i32_0 = arith.constant 0 : i32
    %c0_i32_1 = arith.constant 0 : i32
    return %c0_i32, %c0_i32_0 : i32, i32
  }
  func.func @transform_4(%arg0: i32) -> (i32, i32) {
    %c0_i32 = arith.constant 0 : i32
    %c0_i32_0 = arith.constant 0 : i32
    %c0_i32_1 = arith.constant 0 : i32
    return %c0_i32, %c0_i32_0 : i32, i32
  }
  func.func @transform_5(%arg0: i32) -> (i32, i32) {
    %c0_i32 = arith.constant 0 : i32
    %c0_i32_0 = arith.constant 0 : i32
    %c0_i32_1 = arith.constant 0 : i32
    return %c0_i32, %c0_i32_0 : i32, i32
  }
  func.func @transform_6(%arg0: i32) -> (i32, i32) {
    %c0_i32 = arith.constant 0 : i32
    %c0_i32_0 = arith.constant 0 : i32
    %c0_i32_1 = arith.constant 0 : i32
    return %c0_i32, %c0_i32_0 : i32, i32
  }
}

</mosaic_0001>

<bundles_post_ra>
// kernel: lstmnet_forward.1
= control target key start
LH: loop header
LB: loop body
LE: loop exit
PB: predicated region body
PF: predicated region fallthrough
CT: control target
= control target key end

     0   :  { %v2544_v3 = vmov 0.0|0.0   ;;  %vm2545_vm0 = vmmov 0   ;;  %v2546_v6 = vmov 0.0   ;;  %vm28_vm1 = vcmask 254976   ;;  %s2978_s0 = inlined_call_operand.vmem [shape: f32[8,2,128], index: 0, kind: input, shape index: {}]   ;;  %s2979_s1 = inlined_call_operand.vmem [shape: f32[32,128], index: 1, kind: input, shape index: {}]   ;;  %s2980_s2 = inlined_call_operand.vmem [shape: f32[64,128], index: 2, kind: input, shape index: {}]   ;;  %s2981_s3 = inlined_call_operand.vmem [shape: f32[1,128], index: 3, kind: input, shape index: {}]   ;;  %s2982_s4 = inlined_call_operand.vmem [shape: f32[32,6], index: 4, kind: input, shape index: {}]   ;;  %s2983_s5 = inlined_call_operand.vmem [shape: f32[1,6], index: 5, kind: input, shape index: {}]   ;;  %s2984_s6 = inlined_call_operand.hbm [shape: f32[2,6], index: 6, kind: output, shape index: {}]  }
   0x1   :  { %v33_v0 = vld [vmem:[%s2979_s1] sm:$0xff]  ;;  %v34_v1 = vld [vmem:[%s2979_s1 + $0x8] sm:$0xff]  ;;  %v35_v2 = vld [vmem:[%s2979_s1 + $0x10] sm:$0xff]  ;;  %2235 = vmatprep.subr.bf16.mxu0 %v2544_v3  ;;  %1992 = vmatprep.mubr.msk.f32.mxu0 %vm2545_vm0, %v2546_v6  ;;  %29 = vst.msk [vmem:[#allocation2] sm:$0x3] %vm28_vm1, %v2546_v6 }
   0x2   :  { %v2596_v4 = vpack.c.bf16 %v34_v1, %v33_v0  ;;  %v36_v5 = vld [vmem:[%s2979_s1 + $0x18] sm:$0xff]  ;;  %30 = vst.msk [vmem:[#allocation3] sm:$0x3] %vm28_vm1, %v2546_v6  ;;  %31 = vst.msk [vmem:[#allocation4] sm:$0x3] %vm28_vm1, %v2546_v6  ;;  %2241 = vmatprep.subr.bf16.mxu1 %v2544_v3  ;;  %2011 = vmatprep.mubr.msk.f32.mxu1 %vm2545_vm0, %v2546_v6 }
   0x3   :  { %32 = vst.msk [vmem:[#allocation5] sm:$0x3] %vm28_vm1, %v2546_v6 }
   0x4   :  { %11 = vsyncpa [#allocation7], 0  ;;  %2237 = vmatpush3.bf16.msra.mxu0 %v2596_v4  ;;  %v2615_v7 = vpack.c.bf16 %v36_v5, %v35_v2  ;;  %vm51_vm2 = vcmask 261120   ;;  %v50_v9 = vld [vmem:[%s2978_s0] sm:$0x3]  ;;  %s2547_s30 = smov 64  }
   0x5   :  { %2238 = vmatprep.subr.bf16.mxu0 %v2544_v3  ;;  %s2548_s7 = smov 32   ;;  %v37_v25 = vld [vmem:[%s2980_s2] sm:$0xff]  ;;  %v38_v26 = vld [vmem:[%s2980_s2 + $0x8] sm:$0xff]  ;;  %v39_v27 = vld [vmem:[%s2980_s2 + $0x10] sm:$0xff]  ;;  %vm169_vm3 = vcmask 523264   ;;  %s2549_s22 = smov 96  }
   0x6   :  { %v2645_v28 = vpack.c.bf16 %v38_v26, %v37_v25  ;;  %v40_v29 = vld [vmem:[%s2980_s2 + $0x18] sm:$0xff]  ;;  %v41_v31 = vld [vmem:[%s2980_s2 + $0x20] sm:$0xff]  ;;  %v42_v32 = vld [vmem:[%s2980_s2 + $0x28] sm:$0xff]  ;;  %s2550_s23 = smov [#allocation6]   ;;  %vm1809_vm4 = vcmask 41984  }
   0x7   :  { %v2651_v30 = vpack.c.bf16 %v40_v29, %v39_v27  ;;  %v2661_v33 = vpack.c.bf16 %v42_v32, %v41_v31  ;;  %v43_v34 = vld [vmem:[%s2980_s2 + $0x30] sm:$0xff]  ;;  %v44_v35 = vld [vmem:[%s2980_s2 + $0x38] sm:$0xff]  ;;  %v1830_v44 = vld [vmem:[%s2978_s0 + $0x2] sm:$0x3]  ;;  %s1817_s2 = sshll.u32 %s2550_s23, 4  ;;  %s1818_s2 = int_to_ptr.vmem [resolvable:$true] %s1817_s2 }
   0x8   :  { %2240 = vmatpush3.bf16.msra.mxu0 %v2615_v7  ;;  %v46_v8 = vld [vmem:[#allocation2] sm:$0x3]  ;;  %2243 = vmatpush3.bf16.msra.mxu1 %v2645_v28  ;;  %v2672_v37 = vpack.c.bf16 %v44_v35, %v43_v34  ;;  %p2525_p1 = scmp.lt.s32.totalorder %s1818_s2, %s1818_s2 }
   0x9   :  { %2253 = vmatprep.subr.bf16.mxu0 %v2544_v3  ;;  %v47_v14 = vld [vmem:[#allocation3] sm:$0x3]  ;;  %2244 = vmatprep.subr.bf16.mxu1 %v2544_v3  ;;  %v48_v38 = vld [vmem:[#allocation4] sm:$0x3]  ;;  %v2704_v45 = vld [vmem:[%s2981_s3] ss:$0 sm:$0xff] }
   0xa   :  { %v49_v54 = vld [vmem:[#allocation5] sm:$0x3] }
   0xb   :  { %1993 = vmatmul.mubr.msk.f32.vlgmr.msra.gmra.mrb[0].mxu0 %vm51_vm2, %v46_v8 }
   0xc   :  { %2255 = vmatpush3.bf16.msra.mxu0 %v2596_v4  ;;  %2022 = vmatprep.mubr.msk.f32.mxu0 %vm2545_vm0, %v2546_v6 }
   0xd   :  { %2256 = vmatprep.subr.bf16.mxu0 %v2544_v3  ;;  %2246 = vmatpush3.bf16.msra.mxu1 %v2651_v30 }
   0xe   :  { %2247 = vmatprep.subr.bf16.mxu1 %v2544_v3 }
  0x10   :  { %2258 = vmatpush3.bf16.msra.mxu0 %v2615_v7 }
  0x11   :  { %2259 = vmatprep.subr.bf16.mxu0 %v2544_v3  ;;  %2249 = vmatpush3.bf16.msra.mxu1 %v2661_v33 }
  0x12   :  { %2250 = vmatprep.subr.bf16.mxu1 %v2544_v3 }
  0x15   :  { %2252 = vmatpush3.bf16.msra.mxu1 %v2672_v37 }
  0x16   :  { %2271 = vmatprep.subr.bf16.mxu1 %v2544_v3 }
  0xde   :  { %v121_v10 = vpop.f32.mrb[0].mxu0 }
  0xdf   :  { %v125_v11 = vadd.f32 %v121_v10, %v50_v9  ;;  %v1994_v12 = vpop.f32.mrb[1].mxu0 }
  0xe1   :  { %2392 = vtanh.f32 %v125_v11  ;;  %v1826_v15 = vmul.f32 -1.442695, %v125_v11 }
  0xe3   :  { %2394 = vpow2.f32 %v1826_v15 }
  0xeb   :  { %v2393_v13 = vpop.eup %2392 }
  0xec   :  { %139 = vrot.lane.b32.xlu0 %v2393_v13, %s2547_s30 }
  0xed   :  { %v2395_v16 = vpop.eup %2394 }
  0xee   :  { %v129_v17 = vadd.f32 1.0, %v2395_v16 }
  0xf0   :  { %134 = vrot.lane.b32.xlu0 %v47_v14, %s2548_s7  ;;  %2396 = vrcp.f32 %v129_v17 }
  0xfa   :  { %v2397_v18 = vpop.eup %2396 }
 0x15e   :  { %v140_v19 = vpop.permute.xlu0 %139 }
 0x15f   :  { %v142_v20 = vmul.f32 %v2397_v18, %v140_v19 }
 0x161   :  { %144 = vrot.lane.b32.xlu1 %v142_v20, %s2548_s7 }
 0x162   :  { %v135_v21 = vpop.permute.xlu0 %134 }
 0x163   :  { %v137_v22 = vmul.f32 %v2397_v18, %v135_v21 }
 0x1d3   :  { %v145_v23 = vpop.permute.xlu1 %144 }
 0x1d4   :  { %v2633_v24 = vadd.f32 %v145_v23, %v137_v22  ;;  %v1835_v23 = vld [vmem:[%s2978_s0 + $0x4] sm:$0x3] }
 0x1d6   :  { %2398 = vtanh.f32 %v2633_v24 }
 0x1e0   :  { %v2399_v36 = vpop.eup %2398 }
 0x1e1   :  { %150 = vrot.lane.b32.xlu1 %v2399_v36, %s2547_s30 }
 0x1e5   :  { %159 = vrot.lane.b32.xlu1 %v48_v38, %s2548_s7 }
 0x253   :  { %v151_v39 = vpop.permute.xlu1 %150 }
 0x254   :  { %v153_v40 = vmul.f32 %v2397_v18, %v151_v39 }
 0x256   :  { %155 = vrot.lane.b32.xlu0 %v153_v40, %s2548_s7 }
 0x257   :  { %v160_v41 = vpop.permute.xlu1 %159 }
 0x2c8   :  { %v156_v42 = vpop.permute.xlu0 %155 }
 0x2c9   :  { %v162_v43 = vsel %vm51_vm2, %v156_v42, %v160_v41  ;;  %2023 = vmatmul.mubr.msk.f32.vlgmr.msra.gmra.mrb[2].mxu0 %vm51_vm2, %v156_v42 }
 0x2ca   :  { %2012 = vmatmul.mubr.msk.f32.vlgmr.msra.gmra.mrb[0].mxu1 %vm169_vm3, %v162_v43  ;;  %2261 = vmatpush3.bf16.msra.mxu0 %v2645_v28 }
 0x2cb   :  { %2262 = vmatprep.subr.bf16.mxu0 %v2544_v3  ;;  %2273 = vmatpush3.bf16.msra.mxu1 %v2596_v4 }
 0x2cc   :  { %2274 = vmatprep.subr.bf16.mxu1 %v2544_v3  ;;  %2052 = vmatprep.mubr.msk.f32.mxu1 %vm2545_vm0, %v2546_v6 }
 0x2cd   :  { %2041 = vmatprep.mubr.msk.f32.mxu0 %vm2545_vm0, %v2546_v6 }
 0x2ce   :  { %2264 = vmatpush3.bf16.msra.mxu0 %v2651_v30 }
 0x2cf   :  { %2265 = vmatprep.subr.bf16.mxu0 %v2544_v3  ;;  %2276 = vmatpush3.bf16.msra.mxu1 %v2615_v7 }
 0x2d0   :  { %2277 = vmatprep.subr.bf16.mxu1 %v2544_v3 }
 0x2d2   :  { %2267 = vmatpush3.bf16.msra.mxu0 %v2661_v33 }
 0x2d3   :  { %2268 = vmatprep.subr.bf16.mxu0 %v2544_v3 }
 0x2d6   :  { %2270 = vmatpush3.bf16.msra.mxu0 %v2672_v37 }
 0x2d7   :  { %2289 = vmatprep.subr.bf16.mxu0 %v2544_v3 }
 0x39c   :  { %v341_v46 = vpop.f32.mrb[2].mxu0 }
 0x39d   :  { %v345_v47 = vadd.f32 %v1830_v44, %v341_v46  ;;  %v239_v48 = vpop.f32.mrb[0].mxu1  ;;  %v2024_v49 = vpop.f32.mrb[3].mxu0 }
 0x39e   :  { %v240_v50 = vadd.f32 %v2704_v45, %v239_v48  ;;  %v2013_v51 = vpop.f32.mrb[1].mxu1 }
 0x39f   :  { %2400 = vtanh.f32 %v345_v47  ;;  %v1832_v55 = vmul.f32 -1.442695, %v345_v47 }
 0x3a0   :  { %2402 = vtanh.f32 %v240_v50  ;;  %v1829_v56 = vmul.f32 -1.442695, %v240_v50 }
 0x3a1   :  { %2404 = vpow2.f32 %v1832_v55 }
 0x3a2   :  { %2406 = vpow2.f32 %v1829_v56 }
 0x3a9   :  { %v2401_v52 = vpop.eup %2400 }
 0x3aa   :  { %v2403_v53 = vpop.eup %2402  ;;  %355 = vrot.lane.b32.xlu1 %v2401_v52, %s2547_s30 }
 0x3ab   :  { %256 = vrot.lane.b32.xlu0 %v2403_v53, %s2547_s30  ;;  %v2405_v57 = vpop.eup %2404 }
 0x3ac   :  { %v2407_v58 = vpop.eup %2406  ;;  %v349_v59 = vadd.f32 1.0, %v2405_v57 }
 0x3ad   :  { %v246_v60 = vadd.f32 1.0, %v2407_v58 }
 0x3ae   :  { %2408 = vrcp.f32 %v349_v59 }
 0x3af   :  { %251 = vrot.lane.b32.xlu0 %v49_v54, %s2548_s7  ;;  %2410 = vrcp.f32 %v246_v60 }
 0x3b8   :  { %v2409_v61 = vpop.eup %2408 }
 0x3b9   :  { %v2411_v63 = vpop.eup %2410  ;;  %v353_v8 = vmul.f32 %v2409_v61, %v2633_v24 }
 0x41c   :  { %v356_v62 = vpop.permute.xlu1 %355 }
 0x41d   :  { %v358_v0 = vmul.f32 %v2409_v61, %v356_v62  ;;  %v257_v1 = vpop.permute.xlu0 %256 }
 0x41e   :  { %v259_v2 = vmul.f32 %v2411_v63, %v257_v1 }
 0x41f   :  { %360 = vrot.lane.b32.xlu0 %v358_v0, %s2548_s7  ;;  %v1840_v0 = vld [vmem:[%s2978_s0 + $0x6] sm:$0x3] }
 0x420   :  { %261 = vrot.lane.b32.xlu1 %v259_v2, %s2548_s7 }
 0x421   :  { %v252_v5 = vpop.permute.xlu0 %251 }
 0x422   :  { %v254_v9 = vmul.f32 %v2411_v63, %v252_v5 }
 0x491   :  { %v361_v10 = vpop.permute.xlu0 %360 }
 0x492   :  { %v2713_v11 = vadd.f32 %v361_v10, %v353_v8  ;;  %v262_v12 = vpop.permute.xlu1 %261 }
 0x493   :  { %v2715_v13 = vadd.f32 %v262_v12, %v254_v9 }
 0x494   :  { %2412 = vtanh.f32 %v2713_v11 }
 0x495   :  { %2414 = vtanh.f32 %v2715_v13 }
 0x49e   :  { %v2413_v14 = vpop.eup %2412 }
 0x49f   :  { %v2415_v15 = vpop.eup %2414  ;;  %366 = vrot.lane.b32.xlu0 %v2413_v14, %s2547_s30 }
 0x4a0   :  { %267 = vrot.lane.b32.xlu1 %v2415_v15, %s2547_s30 }
 0x511   :  { %v367_v16 = vpop.permute.xlu0 %366 }
 0x512   :  { %v369_v17 = vmul.f32 %v2409_v61, %v367_v16  ;;  %v268_v18 = vpop.permute.xlu1 %267 }
 0x513   :  { %v270_v19 = vmul.f32 %v2411_v63, %v268_v18 }
 0x514   :  { %371 = vrot.lane.b32.xlu1 %v369_v17, %s2548_s7 }
 0x515   :  { %375 = vrot.lane.b32.xlu0 %v270_v19, %s2547_s30 }
 0x586   :  { %v372_v20 = vpop.permute.xlu1 %371 }
 0x587   :  { %2053 = vmatmul.mubr.msk.f32.vlgmr.msra.gmra.mrb[2].mxu1 %vm51_vm2, %v372_v20  ;;  %v376_v21 = vpop.permute.xlu0 %375 }
 0x588   :  { %v378_v22 = vsel %vm51_vm2, %v372_v20, %v376_v21  ;;  %2279 = vmatpush3.bf16.msra.mxu1 %v2645_v28  ;;  %2071 = vmatprep.mubr.msk.f32.mxu1 %vm2545_vm0, %v2546_v6 }
 0x589   :  { %2042 = vmatmul.mubr.msk.f32.vlgmr.msra.gmra.mrb[4].mxu0 %vm169_vm3, %v378_v22  ;;  %2280 = vmatprep.subr.bf16.mxu1 %v2544_v3 }
 0x58a   :  { %2291 = vmatpush3.bf16.msra.mxu0 %v2596_v4  ;;  %2082 = vmatprep.mubr.msk.f32.mxu0 %vm2545_vm0, %v2546_v6 }
 0x58b   :  { %2292 = vmatprep.subr.bf16.mxu0 %v2544_v3 }
 0x58c   :  { %2282 = vmatpush3.bf16.msra.mxu1 %v2651_v30 }
 0x58d   :  { %2283 = vmatprep.subr.bf16.mxu1 %v2544_v3 }
 0x58e   :  { %2294 = vmatpush3.bf16.msra.mxu0 %v2615_v7 }
 0x58f   :  { %2295 = vmatprep.subr.bf16.mxu0 %v2544_v3 }
 0x590   :  { %2285 = vmatpush3.bf16.msra.mxu1 %v2661_v33 }
 0x591   :  { %2286 = vmatprep.subr.bf16.mxu1 %v2544_v3 }
 0x594   :  { %2288 = vmatpush3.bf16.msra.mxu1 %v2672_v37 }
 0x595   :  { %2307 = vmatprep.subr.bf16.mxu1 %v2544_v3 }
 0x65a   :  { %v546_v24 = vpop.f32.mrb[2].mxu1 }
 0x65b   :  { %v550_v25 = vadd.f32 %v1835_v23, %v546_v24  ;;  %v2054_v26 = vpop.f32.mrb[3].mxu1 }
 0x65c   :  { %v448_v27 = vpop.f32.mrb[4].mxu0 }
 0x65d   :  { %2416 = vtanh.f32 %v550_v25  ;;  %v449_v29 = vadd.f32 %v2704_v45, %v448_v27  ;;  %v2043_v31 = vpop.f32.mrb[5].mxu0  ;;  %v1837_v35 = vmul.f32 -1.442695, %v550_v25 }
 0x65f   :  { %2418 = vtanh.f32 %v449_v29  ;;  %v1834_v36 = vmul.f32 -1.442695, %v449_v29 }
 0x660   :  { %2420 = vpow2.f32 %v1837_v35 }
 0x661   :  { %2422 = vpow2.f32 %v1834_v36 }
 0x667   :  { %v2417_v32 = vpop.eup %2416 }
 0x668   :  { %560 = vrot.lane.b32.xlu0 %v2417_v32, %s2547_s30 }
 0x669   :  { %v2419_v34 = vpop.eup %2418 }
 0x66a   :  { %461 = vrot.lane.b32.xlu1 %v2419_v34, %s2547_s30  ;;  %v2421_v38 = vpop.eup %2420 }
 0x66b   :  { %v2423_v39 = vpop.eup %2422  ;;  %v554_v40 = vadd.f32 1.0, %v2421_v38 }
 0x66c   :  { %v455_v41 = vadd.f32 1.0, %v2423_v39 }
 0x66d   :  { %2424 = vrcp.f32 %v554_v40 }
 0x66e   :  { %2426 = vrcp.f32 %v455_v41 }
 0x677   :  { %v2425_v42 = vpop.eup %2424 }
 0x678   :  { %v2427_v46 = vpop.eup %2426  ;;  %v558_v49 = vmul.f32 %v2425_v42, %v2713_v11 }
 0x679   :  { %v459_v52 = vmul.f32 %v2427_v46, %v2715_v13 }
 0x6da   :  { %v561_v43 = vpop.permute.xlu0 %560 }
 0x6db   :  { %v563_v44 = vmul.f32 %v2425_v42, %v561_v43 }
 0x6dc   :  { %v462_v47 = vpop.permute.xlu1 %461 }
 0x6dd   :  { %565 = vrot.lane.b32.xlu0 %v563_v44, %s2548_s7  ;;  %v464_v48 = vmul.f32 %v2427_v46, %v462_v47  ;;  %v1845_v44 = vld [vmem:[%s2978_s0 + $0x8] sm:$0x3] }
 0x6df   :  { %466 = vrot.lane.b32.xlu1 %v464_v48, %s2548_s7 }
 0x74f   :  { %v566_v50 = vpop.permute.xlu0 %565 }
 0x750   :  { %v2751_v51 = vadd.f32 %v566_v50, %v558_v49 }
 0x751   :  { %v467_v53 = vpop.permute.xlu1 %466 }
 0x752   :  { %2428 = vtanh.f32 %v2751_v51  ;;  %v2755_v54 = vadd.f32 %v467_v53, %v459_v52 }
 0x754   :  { %2430 = vtanh.f32 %v2755_v54 }
 0x75c   :  { %v2429_v55 = vpop.eup %2428 }
 0x75d   :  { %571 = vrot.lane.b32.xlu0 %v2429_v55, %s2547_s30 }
 0x75e   :  { %v2431_v56 = vpop.eup %2430 }
 0x75f   :  { %472 = vrot.lane.b32.xlu1 %v2431_v56, %s2547_s30 }
 0x7cf   :  { %v572_v57 = vpop.permute.xlu0 %571 }
 0x7d0   :  { %v574_v58 = vmul.f32 %v2425_v42, %v572_v57 }
 0x7d1   :  { %v473_v59 = vpop.permute.xlu1 %472 }
 0x7d2   :  { %576 = vrot.lane.b32.xlu1 %v574_v58, %s2548_s7  ;;  %v475_v60 = vmul.f32 %v2427_v46, %v473_v59 }
 0x7d4   :  { %580 = vrot.lane.b32.xlu0 %v475_v60, %s2547_s30 }
 0x844   :  { %v577_v61 = vpop.permute.xlu1 %576 }
 0x845   :  { %2083 = vmatmul.mubr.msk.f32.vlgmr.msra.gmra.mrb[6].mxu0 %vm51_vm2, %v577_v61 }
 0x846   :  { %2297 = vmatpush3.bf16.msra.mxu0 %v2645_v28  ;;  %2101 = vmatprep.mubr.msk.f32.mxu0 %vm2545_vm0, %v2546_v6  ;;  %v581_v62 = vpop.permute.xlu0 %580 }
 0x847   :  { %2298 = vmatprep.subr.bf16.mxu0 %v2544_v3  ;;  %v583_v63 = vsel %vm51_vm2, %v577_v61, %v581_v62 }
 0x848   :  { %2072 = vmatmul.mubr.msk.f32.vlgmr.msra.gmra.mrb[4].mxu1 %vm169_vm3, %v583_v63 }
 0x849   :  { %2309 = vmatpush3.bf16.msra.mxu1 %v2596_v4  ;;  %2112 = vmatprep.mubr.msk.f32.mxu1 %vm2545_vm0, %v2546_v6 }
 0x84a   :  { %2300 = vmatpush3.bf16.msra.mxu0 %v2651_v30  ;;  %2310 = vmatprep.subr.bf16.mxu1 %v2544_v3 }
 0x84b   :  { %2301 = vmatprep.subr.bf16.mxu0 %v2544_v3 }
 0x84d   :  { %2312 = vmatpush3.bf16.msra.mxu1 %v2615_v7 }
 0x84e   :  { %2303 = vmatpush3.bf16.msra.mxu0 %v2661_v33  ;;  %2313 = vmatprep.subr.bf16.mxu1 %v2544_v3 }
 0x84f   :  { %2304 = vmatprep.subr.bf16.mxu0 %v2544_v3 }
 0x852   :  { %2306 = vmatpush3.bf16.msra.mxu0 %v2672_v37 }
 0x853   :  { %2325 = vmatprep.subr.bf16.mxu0 %v2544_v3 }
 0x918   :  { %v751_v1 = vpop.f32.mrb[6].mxu0 }
 0x919   :  { %v755_v2 = vadd.f32 %v1840_v0, %v751_v1  ;;  %v2084_v5 = vpop.f32.mrb[7].mxu0 }
 0x91b   :  { %2432 = vtanh.f32 %v755_v2  ;;  %v653_v8 = vpop.f32.mrb[4].mxu1  ;;  %v1842_v13 = vmul.f32 -1.442695, %v755_v2 }
 0x91c   :  { %v654_v9 = vadd.f32 %v2704_v45, %v653_v8  ;;  %v2073_v10 = vpop.f32.mrb[5].mxu1 }
 0x91e   :  { %2434 = vtanh.f32 %v654_v9  ;;  %v1839_v14 = vmul.f32 -1.442695, %v654_v9 }
 0x91f   :  { %2436 = vpow2.f32 %v1842_v13 }
 0x920   :  { %2438 = vpow2.f32 %v1839_v14 }
 0x925   :  { %v2433_v11 = vpop.eup %2432 }
 0x926   :  { %765 = vrot.lane.b32.xlu0 %v2433_v11, %s2547_s30 }
 0x928   :  { %v2435_v12 = vpop.eup %2434 }
 0x929   :  { %666 = vrot.lane.b32.xlu1 %v2435_v12, %s2547_s30  ;;  %v2437_v15 = vpop.eup %2436 }
 0x92a   :  { %v759_v16 = vadd.f32 1.0, %v2437_v15  ;;  %v2439_v17 = vpop.eup %2438 }
 0x92b   :  { %v660_v18 = vadd.f32 1.0, %v2439_v17 }
 0x92c   :  { %2440 = vrcp.f32 %v759_v16 }
 0x92d   :  { %2442 = vrcp.f32 %v660_v18 }
 0x936   :  { %v2441_v19 = vpop.eup %2440 }
 0x937   :  { %v2443_v22 = vpop.eup %2442  ;;  %v763_v25 = vmul.f32 %v2441_v19, %v2751_v51 }
 0x938   :  { %v664_v29 = vmul.f32 %v2443_v22, %v2755_v54 }
 0x998   :  { %v766_v20 = vpop.permute.xlu0 %765 }
 0x999   :  { %v768_v21 = vmul.f32 %v2441_v19, %v766_v20 }
 0x99b   :  { %770 = vrot.lane.b32.xlu0 %v768_v21, %s2548_s7  ;;  %v667_v23 = vpop.permute.xlu1 %666  ;;  %v1850_v21 = vld [vmem:[%s2978_s0 + $0xa] sm:$0x3] }
 0x99c   :  { %v669_v24 = vmul.f32 %v2443_v22, %v667_v23 }
 0x99e   :  { %671 = vrot.lane.b32.xlu1 %v669_v24, %s2548_s7 }
 0xa0d   :  { %v771_v26 = vpop.permute.xlu0 %770 }
 0xa0e   :  { %v2790_v27 = vadd.f32 %v771_v26, %v763_v25 }
 0xa10   :  { %2444 = vtanh.f32 %v2790_v27  ;;  %v672_v31 = vpop.permute.xlu1 %671 }
 0xa11   :  { %v2794_v32 = vadd.f32 %v672_v31, %v664_v29 }
 0xa13   :  { %2446 = vtanh.f32 %v2794_v32 }
 0xa1a   :  { %v2445_v34 = vpop.eup %2444 }
 0xa1b   :  { %776 = vrot.lane.b32.xlu0 %v2445_v34, %s2547_s30 }
 0xa1d   :  { %v2447_v35 = vpop.eup %2446 }
 0xa1e   :  { %677 = vrot.lane.b32.xlu1 %v2447_v35, %s2547_s30 }
 0xa8d   :  { %v777_v36 = vpop.permute.xlu0 %776 }
 0xa8e   :  { %v779_v38 = vmul.f32 %v2441_v19, %v777_v36 }
 0xa90   :  { %781 = vrot.lane.b32.xlu1 %v779_v38, %s2548_s7  ;;  %v678_v39 = vpop.permute.xlu1 %677 }
 0xa91   :  { %v680_v40 = vmul.f32 %v2443_v22, %v678_v39 }
 0xa93   :  { %785 = vrot.lane.b32.xlu0 %v680_v40, %s2547_s30 }
 0xb02   :  { %v782_v41 = vpop.permute.xlu1 %781 }
 0xb03   :  { %2113 = vmatmul.mubr.msk.f32.vlgmr.msra.gmra.mrb[6].mxu1 %vm51_vm2, %v782_v41 }
 0xb04   :  { %2315 = vmatpush3.bf16.msra.mxu1 %v2645_v28  ;;  %2131 = vmatprep.mubr.msk.f32.mxu1 %vm2545_vm0, %v2546_v6 }
 0xb05   :  { %2316 = vmatprep.subr.bf16.mxu1 %v2544_v3  ;;  %v786_v42 = vpop.permute.xlu0 %785 }
 0xb06   :  { %v788_v43 = vsel %vm51_vm2, %v782_v41, %v786_v42 }
 0xb07   :  { %2102 = vmatmul.mubr.msk.f32.vlgmr.msra.gmra.mrb[8].mxu0 %vm169_vm3, %v788_v43 }
 0xb08   :  { %2318 = vmatpush3.bf16.msra.mxu1 %v2651_v30  ;;  %2327 = vmatpush3.bf16.msra.mxu0 %v2596_v4 }
 0xb09   :  { %2319 = vmatprep.subr.bf16.mxu1 %v2544_v3  ;;  %2328 = vmatprep.subr.bf16.mxu0 %v2544_v3 }
 0xb0a   :  { %2142 = vmatprep.mubr.msk.f32.mxu0 %vm2545_vm0, %v2546_v6 }
 0xb0c   :  { %2321 = vmatpush3.bf16.msra.mxu1 %v2661_v33  ;;  %2330 = vmatpush3.bf16.msra.mxu0 %v2615_v7 }
 0xb0d   :  { %2322 = vmatprep.subr.bf16.mxu1 %v2544_v3  ;;  %2331 = vmatprep.subr.bf16.mxu0 %v2544_v3 }
 0xb10   :  { %2324 = vmatpush3.bf16.msra.mxu1 %v2672_v37 }
 0xb11   :  { %2343 = vmatprep.subr.bf16.mxu1 %v2544_v3 }
 0xbd6   :  { %v956_v46 = vpop.f32.mrb[6].mxu1 }
 0xbd7   :  { %v960_v47 = vadd.f32 %v1845_v44, %v956_v46  ;;  %v2114_v48 = vpop.f32.mrb[7].mxu1 }
 0xbd9   :  { %2448 = vtanh.f32 %v960_v47  ;;  %v1847_v54 = vmul.f32 -1.442695, %v960_v47 }
 0xbda   :  { %v858_v49 = vpop.f32.mrb[8].mxu0 }
 0xbdb   :  { %v859_v50 = vadd.f32 %v2704_v45, %v858_v49  ;;  %v2103_v51 = vpop.f32.mrb[9].mxu0 }
 0xbdd   :  { %2450 = vtanh.f32 %v859_v50  ;;  %v1844_v55 = vmul.f32 -1.442695, %v859_v50 }
 0xbde   :  { %2452 = vpow2.f32 %v1847_v54 }
 0xbdf   :  { %2454 = vpow2.f32 %v1844_v55 }
 0xbe3   :  { %v2449_v52 = vpop.eup %2448 }
 0xbe4   :  { %970 = vrot.lane.b32.xlu0 %v2449_v52, %s2547_s30 }
 0xbe7   :  { %v2451_v53 = vpop.eup %2450 }
 0xbe8   :  { %871 = vrot.lane.b32.xlu1 %v2451_v53, %s2547_s30  ;;  %v2453_v56 = vpop.eup %2452 }
 0xbe9   :  { %v964_v57 = vadd.f32 1.0, %v2453_v56  ;;  %v2455_v58 = vpop.eup %2454 }
 0xbea   :  { %v865_v59 = vadd.f32 1.0, %v2455_v58 }
 0xbeb   :  { %2456 = vrcp.f32 %v964_v57 }
 0xbec   :  { %2458 = vrcp.f32 %v865_v59 }
 0xbf5   :  { %v2457_v60 = vpop.eup %2456 }
 0xbf6   :  { %v2459_v63 = vpop.eup %2458  ;;  %v968_v2 = vmul.f32 %v2457_v60, %v2790_v27 }
 0xbf7   :  { %v869_v9 = vmul.f32 %v2459_v63, %v2794_v32 }
 0xc56   :  { %v971_v61 = vpop.permute.xlu0 %970 }
 0xc57   :  { %v973_v62 = vmul.f32 %v2457_v60, %v971_v61 }
 0xc59   :  { %975 = vrot.lane.b32.xlu0 %v973_v62, %s2548_s7 }
 0xc5a   :  { %v872_v0 = vpop.permute.xlu1 %871 }
 0xc5b   :  { %v874_v1 = vmul.f32 %v2459_v63, %v872_v0 }
 0xc5d   :  { %876 = vrot.lane.b32.xlu1 %v874_v1, %s2548_s7 }
 0xccb   :  { %v976_v5 = vpop.permute.xlu0 %975 }
 0xccc   :  { %v2829_v8 = vadd.f32 %v976_v5, %v968_v2 }
 0xcce   :  { %2460 = vtanh.f32 %v2829_v8 }
 0xccf   :  { %v877_v10 = vpop.permute.xlu1 %876 }
 0xcd0   :  { %v2833_v11 = vadd.f32 %v877_v10, %v869_v9 }
 0xcd2   :  { %2462 = vtanh.f32 %v2833_v11 }
 0xcd8   :  { %v2461_v12 = vpop.eup %2460 }
 0xcd9   :  { %981 = vrot.lane.b32.xlu0 %v2461_v12, %s2547_s30 }
 0xcdc   :  { %v2463_v13 = vpop.eup %2462 }
 0xcdd   :  { %882 = vrot.lane.b32.xlu1 %v2463_v13, %s2547_s30 }
 0xd4b   :  { %v982_v14 = vpop.permute.xlu0 %981 }
 0xd4c   :  { %v984_v15 = vmul.f32 %v2457_v60, %v982_v14 }
 0xd4e   :  { %986 = vrot.lane.b32.xlu1 %v984_v15, %s2548_s7 }
 0xd4f   :  { %v883_v16 = vpop.permute.xlu1 %882 }
 0xd50   :  { %v885_v17 = vmul.f32 %v2459_v63, %v883_v16 }
 0xd52   :  { %990 = vrot.lane.b32.xlu0 %v885_v17, %s2547_s30 }
 0xdc0   :  { %v987_v18 = vpop.permute.xlu1 %986 }
 0xdc1   :  { %2143 = vmatmul.mubr.msk.f32.vlgmr.msra.gmra.mrb[10].mxu0 %vm51_vm2, %v987_v18 }
 0xdc2   :  { %2333 = vmatpush3.bf16.msra.mxu0 %v2645_v28  ;;  %2161 = vmatprep.mubr.msk.f32.mxu0 %vm2545_vm0, %v2546_v6 }
 0xdc3   :  { %2334 = vmatprep.subr.bf16.mxu0 %v2544_v3 }
 0xdc4   :  { %v991_v19 = vpop.permute.xlu0 %990 }
 0xdc5   :  { %v993_v20 = vsel %vm51_vm2, %v987_v18, %v991_v19 }
 0xdc6   :  { %2336 = vmatpush3.bf16.msra.mxu0 %v2651_v30  ;;  %2132 = vmatmul.mubr.msk.f32.vlgmr.msra.gmra.mrb[8].mxu1 %vm169_vm3, %v993_v20 }
 0xdc7   :  { %2337 = vmatprep.subr.bf16.mxu0 %v2544_v3  ;;  %2345 = vmatpush3.bf16.msra.mxu1 %v2596_v4 }
 0xdc8   :  { %2172 = vmatprep.mubr.msk.f32.mxu1 %vm2545_vm0, %v2546_v6  ;;  %2346 = vmatprep.subr.bf16.mxu1 %v2544_v3 }
 0xdca   :  { %2339 = vmatpush3.bf16.msra.mxu0 %v2661_v33 }
 0xdcb   :  { %2340 = vmatprep.subr.bf16.mxu0 %v2544_v3  ;;  %2348 = vmatpush3.bf16.msra.mxu1 %v2615_v7 }
 0xdcc   :  { %2349 = vmatprep.subr.bf16.mxu1 %v2544_v3 }
 0xdce   :  { %2342 = vmatpush3.bf16.msra.mxu0 %v2672_v37 }
 0xdcf   :  { %2361 = vmatprep.subr.bf16.mxu0 %v2544_v3 }
 0xe94   :  { %v1161_v22 = vpop.f32.mrb[10].mxu0 }
 0xe95   :  { %v1165_v23 = vadd.f32 %v1850_v21, %v1161_v22  ;;  %v2144_v24 = vpop.f32.mrb[11].mxu0 }
 0xe97   :  { %2464 = vtanh.f32 %v1165_v23  ;;  %v1852_v32 = vmul.f32 -1.442695, %v1165_v23 }
 0xe99   :  { %v1063_v25 = vpop.f32.mrb[8].mxu1 }
 0xe9a   :  { %v1064_v26 = vadd.f32 %v2704_v45, %v1063_v25  ;;  %v2133_v27 = vpop.f32.mrb[9].mxu1 }
 0xe9c   :  { %2466 = vtanh.f32 %v1064_v26  ;;  %v1849_v34 = vmul.f32 -1.442695, %v1064_v26 }
 0xe9d   :  { %2468 = vpow2.f32 %v1852_v32 }
 0xe9e   :  { %2470 = vpow2.f32 %v1849_v34 }
 0xea1   :  { %v2465_v29 = vpop.eup %2464 }
 0xea2   :  { %1175 = vrot.lane.b32.xlu0 %v2465_v29, %s2547_s30 }
 0xea6   :  { %v2467_v31 = vpop.eup %2466 }
 0xea7   :  { %1076 = vrot.lane.b32.xlu1 %v2467_v31, %s2547_s30  ;;  %v2469_v35 = vpop.eup %2468 }
 0xea8   :  { %v1169_v36 = vadd.f32 1.0, %v2469_v35  ;;  %v2471_v38 = vpop.eup %2470 }
 0xea9   :  { %v1070_v39 = vadd.f32 1.0, %v2471_v38 }
 0xeaa   :  { %2472 = vrcp.f32 %v1169_v36 }
 0xeab   :  { %2474 = vrcp.f32 %v1070_v39 }
 0xeb4   :  { %v2473_v40 = vpop.eup %2472 }
 0xeb5   :  { %v2475_v43 = vpop.eup %2474  ;;  %v1173_v47 = vmul.f32 %v2473_v40, %v2829_v8 }
 0xeb6   :  { %v1074_v50 = vmul.f32 %v2475_v43, %v2833_v11 }
 0xf14   :  { %v1176_v41 = vpop.permute.xlu0 %1175 }
 0xf15   :  { %v1178_v42 = vmul.f32 %v2473_v40, %v1176_v41 }
 0xf17   :  { %1180 = vrot.lane.b32.xlu0 %v1178_v42, %s2548_s7 }
 0xf19   :  { %v1077_v44 = vpop.permute.xlu1 %1076 }
 0xf1a   :  { %v1079_v46 = vmul.f32 %v2475_v43, %v1077_v44 }
 0xf1c   :  { %1081 = vrot.lane.b32.xlu1 %v1079_v46, %s2548_s7 }
 0xf89   :  { %v1181_v48 = vpop.permute.xlu0 %1180 }
 0xf8a   :  { %v2868_v49 = vadd.f32 %v1181_v48, %v1173_v47 }
 0xf8c   :  { %2476 = vtanh.f32 %v2868_v49 }
 0xf8e   :  { %v1082_v51 = vpop.permute.xlu1 %1081 }
 0xf8f   :  { %v2872_v52 = vadd.f32 %v1082_v51, %v1074_v50 }
 0xf91   :  { %2478 = vtanh.f32 %v2872_v52 }
 0xf96   :  { %v2477_v53 = vpop.eup %2476 }
 0xf97   :  { %1186 = vrot.lane.b32.xlu0 %v2477_v53, %s2547_s30 }
 0xf9b   :  { %v2479_v54 = vpop.eup %2478 }
 0xf9c   :  { %1087 = vrot.lane.b32.xlu1 %v2479_v54, %s2547_s30 }
0x1009   :  { %v1187_v55 = vpop.permute.xlu0 %1186 }
0x100a   :  { %v1189_v56 = vmul.f32 %v2473_v40, %v1187_v55 }
0x100c   :  { %1191 = vrot.lane.b32.xlu1 %v1189_v56, %s2548_s7 }
0x100e   :  { %v1088_v57 = vpop.permute.xlu1 %1087 }
0x100f   :  { %v1090_v58 = vmul.f32 %v2475_v43, %v1088_v57 }
0x1011   :  { %1195 = vrot.lane.b32.xlu0 %v1090_v58, %s2547_s30 }
0x107e   :  { %v1192_v59 = vpop.permute.xlu1 %1191 }
0x107f   :  { %2173 = vmatmul.mubr.msk.f32.vlgmr.msra.gmra.mrb[10].mxu1 %vm51_vm2, %v1192_v59 }
0x1080   :  { %2351 = vmatpush3.bf16.msra.mxu1 %v2645_v28  ;;  %2191 = vmatprep.mubr.msk.f32.mxu1 %vm2545_vm0, %v2546_v6 }
0x1081   :  { %2352 = vmatprep.subr.bf16.mxu1 %v2544_v3 }
0x1083   :  { %v1196_v60 = vpop.permute.xlu0 %1195 }
0x1084   :  { %2354 = vmatpush3.bf16.msra.mxu1 %v2651_v30  ;;  %v1198_v61 = vsel %vm51_vm2, %v1192_v59, %v1196_v60 }
0x1085   :  { %2355 = vmatprep.subr.bf16.mxu1 %v2544_v3  ;;  %2162 = vmatmul.mubr.msk.f32.vlgmr.msra.gmra.mrb[12].mxu0 %vm169_vm3, %v1198_v61 }
0x1086   :  { %2363 = vmatpush3.bf16.msra.mxu0 %v2596_v4  ;;  %2202 = vmatprep.mubr.msk.f32.mxu0 %vm2545_vm0, %v2546_v6  ;;  %v1855_v4 = vld [vmem:[%s2978_s0 + $0xc] sm:$0x3] }
0x1087   :  { %2364 = vmatprep.subr.bf16.mxu0 %v2544_v3 }
0x1088   :  { %2357 = vmatpush3.bf16.msra.mxu1 %v2661_v33 }
0x1089   :  { %2358 = vmatprep.subr.bf16.mxu1 %v2544_v3 }
0x108a   :  { %2366 = vmatpush3.bf16.msra.mxu0 %v2615_v7 }
0x108b   :  { %2367 = vmatprep.subr.bf16.mxu0 %v2544_v3 }
0x108c   :  { %2360 = vmatpush3.bf16.msra.mxu1 %v2672_v37 }
0x108d   :  { %2379 = vmatprep.subr.bf16.mxu1 %v2544_v3 }
0x1152   :  { %v1366_v62 = vpop.f32.mrb[10].mxu1 }
0x1153   :  { %v1370_v63 = vadd.f32 %v1855_v4, %v1366_v62  ;;  %v2174_v0 = vpop.f32.mrb[11].mxu1 }
0x1155   :  { %2480 = vtanh.f32 %v1370_v63  ;;  %v1857_v9 = vmul.f32 -1.442695, %v1370_v63 }
0x1158   :  { %v1268_v1 = vpop.f32.mrb[12].mxu0 }
0x1159   :  { %v1269_v2 = vadd.f32 %v2704_v45, %v1268_v1  ;;  %v2163_v5 = vpop.f32.mrb[13].mxu0 }
0x115b   :  { %2482 = vtanh.f32 %v1269_v2  ;;  %v1854_v10 = vmul.f32 -1.442695, %v1269_v2 }
0x115c   :  { %2484 = vpow2.f32 %v1857_v9 }
0x115d   :  { %2486 = vpow2.f32 %v1854_v10 }
0x115f   :  { %v2481_v7 = vpop.eup %2480 }
0x1160   :  { %1380 = vrot.lane.b32.xlu0 %v2481_v7, %s2547_s30 }
0x1165   :  { %v2483_v8 = vpop.eup %2482 }
0x1166   :  { %1281 = vrot.lane.b32.xlu1 %v2483_v8, %s2547_s30  ;;  %v2485_v11 = vpop.eup %2484 }
0x1167   :  { %v1374_v12 = vadd.f32 1.0, %v2485_v11  ;;  %v2487_v13 = vpop.eup %2486 }
0x1168   :  { %v1275_v14 = vadd.f32 1.0, %v2487_v13 }
0x1169   :  { %2488 = vrcp.f32 %v1374_v12 }
0x116a   :  { %2490 = vrcp.f32 %v1275_v14 }
0x1173   :  { %v2489_v15 = vpop.eup %2488 }
0x1174   :  { %v2491_v18 = vpop.eup %2490  ;;  %v1378_v21 = vmul.f32 %v2489_v15, %v2868_v49 }
0x1175   :  { %v1279_v24 = vmul.f32 %v2491_v18, %v2872_v52 }
0x11d2   :  { %v1381_v16 = vpop.permute.xlu0 %1380 }
0x11d3   :  { %v1383_v17 = vmul.f32 %v2489_v15, %v1381_v16 }
0x11d5   :  { %1385 = vrot.lane.b32.xlu0 %v1383_v17, %s2548_s7 }
0x11d8   :  { %v1282_v19 = vpop.permute.xlu1 %1281 }
0x11d9   :  { %v1284_v20 = vmul.f32 %v2491_v18, %v1282_v19 }
0x11db   :  { %1286 = vrot.lane.b32.xlu1 %v1284_v20, %s2548_s7 }
0x1247   :  { %v1386_v22 = vpop.permute.xlu0 %1385 }
0x1248   :  { %v1388_v23 = vadd.f32 %v1386_v22, %v1378_v21 }
0x124a   :  { %2492 = vtanh.f32 %v1388_v23 }
0x124d   :  { %v1287_v25 = vpop.permute.xlu1 %1286 }
0x124e   :  { %v1289_v26 = vadd.f32 %v1287_v25, %v1279_v24  ;;  %v1728_v24 = vld [vmem:[%s2982_s4 + $0x10] sm:$0xff] }
0x1250   :  { %2494 = vtanh.f32 %v1289_v26 }
0x1254   :  { %v2493_v27 = vpop.eup %2492 }
0x1255   :  { %1391 = vrot.lane.b32.xlu0 %v2493_v27, %s2547_s30 }
0x125a   :  { %v2495_v29 = vpop.eup %2494 }
0x125b   :  { %1292 = vrot.lane.b32.xlu1 %v2495_v29, %s2547_s30 }
0x12c7   :  { %v1392_v31 = vpop.permute.xlu0 %1391 }
0x12c8   :  { %v1394_v32 = vmul.f32 %v2489_v15, %v1392_v31 }
0x12ca   :  { %1396 = vrot.lane.b32.xlu1 %v1394_v32, %s2548_s7 }
0x12cd   :  { %v1293_v34 = vpop.permute.xlu1 %1292 }
0x12ce   :  { %v1295_v35 = vmul.f32 %v2491_v18, %v1293_v34 }
0x12d0   :  { %1400 = vrot.lane.b32.xlu0 %v1295_v35, %s2547_s30 }
0x133c   :  { %v1397_v36 = vpop.permute.xlu1 %1396 }
0x133d   :  { %2203 = vmatmul.mubr.msk.f32.vlgmr.msra.gmra.mrb[14].mxu0 %vm51_vm2, %v1397_v36 }
0x133e   :  { %2369 = vmatpush3.bf16.msra.mxu0 %v2645_v28  ;;  %2221 = vmatprep.mubr.msk.f32.mxu0 %vm2545_vm0, %v2546_v6  ;;  %v1860_v28 = vld [vmem:[%s2978_s0 + $0xe] sm:$0x3] }
0x133f   :  { %2370 = vmatprep.subr.bf16.mxu0 %v2544_v3 }
0x1342   :  { %2372 = vmatpush3.bf16.msra.mxu0 %v2651_v30  ;;  %v1401_v38 = vpop.permute.xlu0 %1400 }
0x1343   :  { %2373 = vmatprep.subr.bf16.mxu0 %v2544_v3  ;;  %v1403_v39 = vsel %vm51_vm2, %v1397_v36, %v1401_v38  ;;  %v1865_v36 = vld [vmem:[%s2983_s5] ss:$0 sm:$0xff] }
0x1344   :  { %2192 = vmatmul.mubr.msk.f32.vlgmr.msra.gmra.mrb[12].mxu1 %vm169_vm3, %v1403_v39 }
0x1345   :  { %2232 = vmatprep.mubr.msk.f32.mxu1 %vm2545_vm0, %v2546_v6 }
0x1346   :  { %2375 = vmatpush3.bf16.msra.mxu0 %v2661_v33 }
0x1347   :  { %2376 = vmatprep.subr.bf16.mxu0 %v2544_v3 }
0x134a   :  { %2378 = vmatpush3.bf16.msra.mxu0 %v2672_v37 }
0x1410   :  { %v1571_v30 = vpop.f32.mrb[14].mxu0 }
0x1411   :  { %v1575_v40 = vadd.f32 %v1860_v28, %v1571_v30  ;;  %v2204_v41 = vpop.f32.mrb[15].mxu0 }
0x1413   :  { %2496 = vtanh.f32 %v1575_v40  ;;  %v1862_v37 = vmul.f32 -1.442695, %v1575_v40 }
0x1417   :  { %v1473_v42 = vpop.f32.mrb[12].mxu1 }
0x1418   :  { %v1474_v43 = vadd.f32 %v2704_v45, %v1473_v42  ;;  %v2193_v44 = vpop.f32.mrb[13].mxu1 }
0x141a   :  { %2498 = vtanh.f32 %v1474_v43  ;;  %v1859_v46 = vmul.f32 -1.442695, %v1474_v43 }
0x141b   :  { %2500 = vpow2.f32 %v1862_v37 }
0x141c   :  { %2502 = vpow2.f32 %v1859_v46 }
0x141d   :  { %v2497_v33 = vpop.eup %2496 }
0x141e   :  { %1585 = vrot.lane.b32.xlu0 %v2497_v33, %s2547_s30 }
0x1424   :  { %v2499_v6 = vpop.eup %2498 }
0x1425   :  { %1486 = vrot.lane.b32.xlu1 %v2499_v6, %s2547_s30  ;;  %v2501_v47 = vpop.eup %2500 }
0x1426   :  { %v1579_v48 = vadd.f32 1.0, %v2501_v47  ;;  %v2503_v49 = vpop.eup %2502 }
0x1427   :  { %v1480_v50 = vadd.f32 1.0, %v2503_v49 }
0x1428   :  { %2504 = vrcp.f32 %v1579_v48 }
0x1429   :  { %2506 = vrcp.f32 %v1480_v50 }
0x1432   :  { %v2505_v51 = vpop.eup %2504 }
0x1433   :  { %v2507_v54 = vpop.eup %2506  ;;  %v1583_v57 = vmul.f32 %v2505_v51, %v1388_v23  ;;  %v1727_v23 = vld [vmem:[%s2982_s4 + $0x8] sm:$0xff] }
0x1434   :  { %v1484_v60 = vmul.f32 %v2507_v54, %v1289_v26  ;;  %v1729_v26 = vld [vmem:[%s2982_s4 + $0x18] sm:$0xff] }
0x1435   :  { %v2383_v27 = vpack.c.bf16 %v1729_v26, %v1728_v24 }
0x1490   :  { %v1586_v52 = vpop.permute.xlu0 %1585 }
0x1491   :  { %v1588_v53 = vmul.f32 %v2505_v51, %v1586_v52 }
0x1493   :  { %1590 = vrot.lane.b32.xlu0 %v1588_v53, %s2548_s7 }
0x1497   :  { %v1487_v55 = vpop.permute.xlu1 %1486 }
0x1498   :  { %v1489_v56 = vmul.f32 %v2507_v54, %v1487_v55 }
0x149a   :  { %1491 = vrot.lane.b32.xlu1 %v1489_v56, %s2548_s7 }
0x1505   :  { %v1591_v58 = vpop.permute.xlu0 %1590 }
0x1506   :  { %v1593_v59 = vadd.f32 %v1591_v58, %v1583_v57 }
0x1508   :  { %2508 = vtanh.f32 %v1593_v59 }
0x150c   :  { %v1492_v61 = vpop.permute.xlu1 %1491 }
0x150d   :  { %v1494_v4 = vadd.f32 %v1492_v61, %v1484_v60 }
0x150f   :  { %2510 = vtanh.f32 %v1494_v4 }
0x1512   :  { %v2509_v62 = vpop.eup %2508 }
0x1513   :  { %1596 = vrot.lane.b32.xlu0 %v2509_v62, %s2547_s30 }
0x1519   :  { %v2511_v63 = vpop.eup %2510 }
0x151a   :  { %1497 = vrot.lane.b32.xlu1 %v2511_v63, %s2547_s30 }
0x1585   :  { %v1597_v0 = vpop.permute.xlu0 %1596 }
0x1586   :  { %v1599_v1 = vmul.f32 %v2505_v51, %v1597_v0 }
0x1588   :  { %1601 = vrot.lane.b32.xlu1 %v1599_v1, %s2548_s7 }
0x158c   :  { %v1498_v2 = vpop.permute.xlu1 %1497 }
0x158d   :  { %v1500_v5 = vmul.f32 %v2507_v54, %v1498_v2 }
0x158f   :  { %1605 = vrot.lane.b32.xlu0 %v1500_v5, %s2547_s30 }
0x15fa   :  { %v1602_v7 = vpop.permute.xlu1 %1601 }
0x15fb   :  { %1707 = vst.msk [vmem:[#allocation2] sm:$0x3] %vm28_vm1, %v1602_v7 }
0x1601   :  { %v1606_v8 = vpop.permute.xlu0 %1605 }
0x1602   :  { %v1608_v9 = vsel %vm51_vm2, %v1602_v7, %v1606_v8 }
0x1603   :  { %2222 = vmatmul.mubr.msk.f32.vlgmr.msra.gmra.mrb[16].mxu0 %vm169_vm3, %v1608_v9 }
0x16d6   :  { %v1678_v10 = vpop.f32.mrb[16].mxu0 }
0x16d7   :  { %v1679_v11 = vadd.f32 %v2704_v45, %v1678_v10  ;;  %v2223_v12 = vpop.f32.mrb[17].mxu0  ;;  %v1726_v45 = vld [vmem:[%s2982_s4] sm:$0xff] }
0x16d8   :  { %v2380_v25 = vpack.c.bf16 %v1727_v23, %v1726_v45 }
0x16d9   :  { %2512 = vtanh.f32 %v1679_v11  ;;  %v1864_v14 = vmul.f32 -1.442695, %v1679_v11 }
0x16da   :  { %2381 = vmatpush3.bf16.msra.mxu1 %v2380_v25 }
0x16db   :  { %2514 = vpow2.f32 %v1864_v14  ;;  %2382 = vmatprep.subr.bf16.mxu1 %v2544_v3 }
0x16de   :  { %2384 = vmatpush3.bf16.msra.mxu1 %v2383_v27 }
0x16e3   :  { %v2513_v13 = vpop.eup %2512 }
0x16e4   :  { %1691 = vrot.lane.b32.xlu1 %v2513_v13, %s2547_s30 }
0x16e5   :  { %v2515_v15 = vpop.eup %2514 }
0x16e6   :  { %v1685_v16 = vadd.f32 1.0, %v2515_v15 }
0x16e8   :  { %2516 = vrcp.f32 %v1685_v16 }
0x16f2   :  { %v2517_v17 = vpop.eup %2516 }
0x16f3   :  { %v1689_v20 = vmul.f32 %v2517_v17, %v1494_v4 }
0x1756   :  { %v1692_v18 = vpop.permute.xlu1 %1691 }
0x1757   :  { %v1694_v19 = vmul.f32 %v2517_v17, %v1692_v18 }
0x1759   :  { %1696 = vrot.lane.b32.xlu0 %v1694_v19, %s2548_s7 }
0x17cb   :  { %v1697_v21 = vpop.permute.xlu0 %1696 }
0x17cc   :  { %v1699_v22 = vadd.f32 %v1697_v21, %v1689_v20 }
0x17ce   :  { %2518 = vtanh.f32 %v1699_v22 }
0x17d8   :  { %v2519_v29 = vpop.eup %2518 }
0x17d9   :  { %1702 = vrot.lane.b32.xlu1 %v2519_v29, %s2547_s30 }
0x17dd   :  { %1709 = vrot.lane.b32.xlu1 %v1593_v59, %s2549_s22 }
0x184b   :  { %v1703_v31 = vpop.permute.xlu1 %1702 }
0x184c   :  { %v1705_v32 = vmul.f32 %v2517_v17, %v1703_v31 }
0x184e   :  { %1714 = vrot.lane.b32.xlu0 %v1705_v32, %s2548_s7  ;;  %s2520_s7 = scalar_lea.vmem %s1818_s2, 32 }
0x184f   :  { %v1710_v34 = vpop.permute.xlu1 %1709  ;;  %p2521_p0 = scmp.ne.s32.totalorder %s1818_s2, %s2520_s7  ;;  %p2526_p2 = scmp.lt.s32.totalorder %s2520_s7, %s2520_s7 }
0x1850   :  { %1712 = vst.msk [vmem:[#allocation3] sm:$0x3] %vm28_vm1, %v1710_v34 }
0x1851   :  { %p2527_p3 = por %p2526_p2, %p2525_p1 }
0x1852   :  { %1719 = vrot.lane.b32.xlu0 %v1699_v22, %s2549_s22 }
0x1853   :  { %p2528_p4 = pnand %p2527_p3, %p2521_p0 }
0x18c0   :  { %v1715_v35 = vpop.permute.xlu0 %1714 }
0x18c1   :  { %1717 = vst.msk [vmem:[#allocation4] sm:$0x3] %vm28_vm1, %v1715_v35  ;;  %2233 = vmatmul.mubr.msk.f32.vlgmr.msra.gmra.mrb[14].mxu1 %vm51_vm2, %v1715_v35 }
0x18c4   :  { %v1720_v3 = vpop.permute.xlu0 %1719 }
0x18c5   :  { %1722 = vst.msk [vmem:[#allocation5] sm:$0x3] %vm28_vm1, %v1720_v3 }
0x1994   :  { %v1805_v38 = vpop.f32.mrb[14].mxu1 }
0x1995   :  { %v1806_v39 = vadd.f32 %v1865_v36, %v1805_v38  ;;  %v2234_v28 = vpop.f32.mrb[15].mxu1 }
0x1997   :  { %1810 = vst.msk [vmem:[#allocation6] sm:$0x3] %vm1809_vm4, %v1806_v39 }
0x1998   :  { %2531 = shalt.err (!%p2528_p4)
}
0x1999   :  { %s2532_s26 = scalar_lea.hbm %s2984_s6, 32 }
0x199a   :  { %p2533_p5 = scmp.ne.s32.totalorder %s2984_s6, %s2532_s26  ;;  %p2536_p6 = scmp.lt.u32.totalorder %s2532_s26, %s2984_s6 }
0x199c   :  { %p2538_p7 = pnand %p2536_p6, %p2533_p5 }
0x199e   :  { %2541 = shalt.err (!%p2538_p7)
}
0x199f   :  { %1820 = dma.vmem_to_hbm [thread:$0]  %s1818_s2, 32, %s2984_s6, [#allocation7]  }
0x19a0   :  { %2542 = dma.done.wait [#allocation7], 32  }
0x19a1   :  { %2543 = vsyncadd [#allocation7], 4294967264 }
0x19a2   :  { %1824 = vsyncpa [#allocation7], 1 }

</bundles_post_ra>
